<compile_context>
chip_gen: v7x
topology: tpu7x:2x2x1
jax: 0.10.0
libtpu: 0.0.40
codegen_flags: <defaults>
</compile_context>

<pallas_src>
import functools
import math

import jax
import jax.numpy as jnp
from jax import lax
from jax.experimental import pallas as pl
from jax.experimental.pallas import tpu as pltpu

_LANES = 128


def _round_up(v, m):
    return (v + m - 1) // m * m


def _bottleneck_kernel(H, W, d, x_ref, w1_ref, w2_ref, w3_ref,
                       b1_ref, b2_ref, b3_ref, o_ref, pad_ref):
    """Fused Bottleneck forward for one image (spatial dims flattened).

    x_ref  : (H*W, Cp)    input, f32  (Cp = padded inplanes = padded 4*planes)
    w1_ref : (Cp, Pp)     conv1 1x1 weight, bf16, BN1 scale folded in
    w2_ref : (9, Pp, Pp)  conv2 3x3 weight (tap k = 3*ki + kj), bf16, BN2 folded
    w3_ref : (Pp, Cp)     conv3 1x1 weight, bf16, BN3 scale folded in
    b*_ref : (1, C)       folded BatchNorm biases, f32
    o_ref  : (H*W, Cp)    output, f32
    pad_ref: (H, W+2d, Pp) VMEM scratch holding h1 with a zero column halo
    """
    HW = H * W
    Pp = w1_ref.shape[1]
    f32 = jnp.float32
    bf16 = jnp.bfloat16

    x = x_ref[...]                                   # (HW, Cp) f32, also residual
    b1 = b1_ref[...]
    b2 = b2_ref[...]
    b3 = b3_ref[...]

    # ---- conv1 (1x1) + bn1 + relu  (bf16 operands, f32 accumulation) -------
    h1 = jnp.dot(x.astype(bf16), w1_ref[...], preferred_element_type=f32)
    h1 = jnp.maximum(h1 + b1, 0.0)                   # (HW, Pp) f32

    # ---- conv2 (3x3, dilation=d, padding=d) + bn2 + relu --------------------
    # Column halo: store h1 once into a scratch with a 2*d-wide zero border
    # (only the halo columns are zeroed -- never the full buffer).  Row halo:
    # built at the value level with concat along the (untiled) major axis.
    zero_cols = jnp.zeros((H, d, Pp), f32)
    pad_ref[:, :d, :] = zero_cols
    pad_ref[:, W + d:, :] = zero_cols
    pad_ref[:, d:W + d, :] = h1.reshape(H, W, Pp)

    acc = None
    for kj in range(3):
        cv = pad_ref[:, kj * d:kj * d + W, :]        # (H, W, Pp): col-shifted view
        for ki in range(3):
            oi = (ki - 1) * d                        # row offset of this tap
            if oi == 0:
                win = cv
            elif oi > 0:
                win = jnp.concatenate(
                    [cv[oi:], jnp.zeros((oi, W, Pp), f32)], axis=0)
            else:
                win = jnp.concatenate(
                    [jnp.zeros((-oi, W, Pp), f32), cv[:H + oi]], axis=0)
            tap = jnp.dot(win.reshape(HW, Pp).astype(bf16),
                          w2_ref[3 * ki + kj], preferred_element_type=f32)
            acc = tap if acc is None else acc + tap
    h2 = jnp.maximum(acc + b2, 0.0)                  # (HW, Pp) f32

    # ---- conv3 (1x1) + bn3 + identity residual + relu -----------------------
    h3 = jnp.dot(h2.astype(bf16), w3_ref[...], preferred_element_type=f32)
    o_ref[...] = jnp.maximum(h3 + b3 + x, 0.0)       # residual add in f32


def bottleneck_forward_nhwc(x_nhwc, params, dilation=1):
    """NHWC in / NHWC out fused Bottleneck (stride=1, downsample=None, eval BN)."""
    x = x_nhwc.astype(jnp.float32)
    N, H, W, Cin = x.shape
    P = params["w1"].shape[1]
    d = int(dilation)
    assert Cin == 4 * P, "identity residual requires inplanes == planes * 4"
    assert 1 <= d < H and d < W, "requires 1 <= dilation < min(H, W)"

    HW = H * W
    Cp = _round_up(Cin, _LANES)   # padded inplanes / outplanes (Cin == 4*P)
    Pp = _round_up(P, _LANES)     # padded bottleneck width

    # One-time parameter prep (outside the kernel): fold BN scales into the conv
    # weights, zero-pad every channel axis to the 128-lane width, cast to bf16.
    w1f = params["w1"] * params["s1"][0]                       # (Cin, P)
    w2f = params["w2"] * params["s2"][0]                       # (3, 3, P, P)
    w3f = params["w3"] * params["s3"][0]                       # (P, 4P)
    w1p = jnp.pad(w1f, ((0, Cp - Cin), (0, Pp - P))).astype(jnp.bfloat16)
    w2p = jnp.pad(w2f.reshape(9, P, P),
                  ((0, 0), (0, Pp - P), (0, Pp - P))).astype(jnp.bfloat16)
    w3p = jnp.pad(w3f, ((0, Pp - P), (0, Cp - Cin))).astype(jnp.bfloat16)
    b1p = jnp.pad(params["b1"].astype(jnp.float32), ((0, 0), (0, Pp - P)))
    b2p = jnp.pad(params["b2"].astype(jnp.float32), ((0, 0), (0, Pp - P)))
    b3p = jnp.pad(params["b3"].astype(jnp.float32), ((0, 0), (0, Cp - Cin)))

    # Flatten spatial dims (free reshape, channels stay in lanes) + pad channels.
    xp = jnp.pad(x.reshape(N, HW, Cin), ((0, 0), (0, 0), (0, Cp - Cin)))

    kernel = functools.partial(_bottleneck_kernel, H, W, d)

    # VMEM budget: double-buffered in/out image blocks + bf16 weights + scratch
    # + headroom for the in-kernel f32 intermediates (h1, window views, acc).
    est = (4 * HW * Cp * 4
           + 2 * ((Cp * Pp + 9 * Pp * Pp + Pp * Cp) * 2 + (2 * Pp + Cp) * 4)
           + H * (W + 2 * d) * Pp * 4
           + 16 * HW * Pp * 4)
    vmem_bytes = int(min(max(est, 32 * 1024 * 1024), 64 * 1024 * 1024))

    out_flat = pl.pallas_call(
        kernel,
        out_shape=jax.ShapeDtypeStruct((N, HW, Cp), jnp.float32),
        grid_spec=pltpu.PrefetchScalarGridSpec(
            num_scalar_prefetch=0,
            grid=(N,),
            in_specs=[
                pl.BlockSpec((pl.Squeezed(), HW, Cp), lambda n: (n, 0, 0)),  # x
                pl.BlockSpec((Cp, Pp), lambda n: (0, 0)),                    # w1
                pl.BlockSpec((9, Pp, Pp), lambda n: (0, 0, 0)),              # w2
                pl.BlockSpec((Pp, Cp), lambda n: (0, 0)),                    # w3
                pl.BlockSpec((1, Pp), lambda n: (0, 0)),                     # b1
                pl.BlockSpec((1, Pp), lambda n: (0, 0)),                     # b2
                pl.BlockSpec((1, Cp), lambda n: (0, 0)),                     # b3
            ],
            out_specs=pl.BlockSpec((pl.Squeezed(), HW, Cp), lambda n: (n, 0, 0)),
            scratch_shapes=[pltpu.VMEM((H, W + 2 * d, Pp), jnp.float32)],
        ),
        compiler_params=pltpu.CompilerParams(
            dimension_semantics=("parallel",),   # batch axis -> 2-TC sharding on v7x
            vmem_limit_bytes=vmem_bytes,
        ),
    )(xp, w1p, w2p, w3p, b1p, b2p, b3p)

    return out_flat[:, :, :Cin].reshape(N, H, W, Cin)


def bottleneck_forward(x_nchw, params, dilation=1):
    """NCHW in / NCHW out, mirroring the PyTorch module's convention.

    Prefer bottleneck_forward_nhwc inside an all-NHWC model: the two full-tensor
    transposes here are pure boundary glue.
    """
    x = jnp.transpose(x_nchw, (0, 2, 3, 1))
    out = bottleneck_forward_nhwc(x, params, dilation)
    return jnp.transpose(out, (0, 3, 1, 2))


def init_params(key, inplanes, planes, eps=1e-5):
    """Deterministic synthetic parameters (shapes from Bottleneck.__init__)."""
    ks = jax.random.split(key, 15)
    w1 = jax.random.normal(ks[0], (inplanes, planes), jnp.float32) / math.sqrt(inplanes)
    w2 = jax.random.normal(ks[1], (3, 3, planes, planes), jnp.float32) / math.sqrt(9 * planes)
    w3 = jax.random.normal(ks[2], (planes, 4 * planes), jnp.float32) / math.sqrt(planes)

    def folded_bn(kg, kb, km, kv, c):
        gamma = 1.0 + 0.1 * jax.random.normal(kg, (c,), jnp.float32)
        beta = 0.1 * jax.random.normal(kb, (c,), jnp.float32)
        mean = 0.1 * jax.random.normal(km, (c,), jnp.float32)
        var = jnp.abs(jax.random.normal(kv, (c,), jnp.float32)) + 0.5
        scale = gamma / jnp.sqrt(var + eps)
        bias = beta - mean * scale
        return scale.reshape(1, c), bias.reshape(1, c)

    s1, b1 = folded_bn(ks[3], ks[4], ks[5], ks[6], planes)
    s2, b2 = folded_bn(ks[7], ks[8], ks[9], ks[10], planes)
    s3, b3 = folded_bn(ks[11], ks[12], ks[13], ks[14], 4 * planes)
    return dict(w1=w1, w2=w2, w3=w3, s1=s1, b1=b1, s2=s2, b2=b2, s3=s3, b3=b3)


def ref_forward(x_nchw, params, dilation=1):
    """Pure-JAX f32 reference (XLA convs) for validation."""
    x = jnp.transpose(x_nchw, (0, 2, 3, 1)).astype(jnp.float32)
    dn = ('NHWC', 'HWIO', 'NHWC')
    d = int(dilation)
    h = lax.conv_general_dilated(x, params["w1"][None, None], (1, 1), 'VALID',
                                 dimension_numbers=dn)
    h = jnp.maximum(h * params["s1"][0] + params["b1"][0], 0.0)
    h = lax.conv_general_dilated(h, params["w2"], (1, 1), [(d, d), (d, d)],
                                 rhs_dilation=(d, d), dimension_numbers=dn)
    h = jnp.maximum(h * params["s2"][0] + params["b2"][0], 0.0)
    h = lax.conv_general_dilated(h, params["w3"][None, None], (1, 1), 'VALID',
                                 dimension_numbers=dn)
    h = h * params["s3"][0] + params["b3"][0]
    out = jnp.maximum(h + x, 0.0)
    return jnp.transpose(out, (0, 3, 1, 2))


if __name__ == "__main__":
    # Bottleneck(inplanes=16, planes=4, stride=1, downsample=None), small spatial.
    N, INPLANES, PLANES, H, W = 2, 16, 4, 16, 16

    key = jax.random.PRNGKey(0)
    kx, kp = jax.random.split(key)
    x = jax.random.normal(kx, (N, INPLANES, H, W), jnp.float32)      # NCHW
    params = init_params(kp, INPLANES, PLANES)

    fwd = jax.jit(bottleneck_forward, static_argnames="dilation")
    for dil in (1, 2):
        out = jax.block_until_ready(fwd(x, params, dilation=dil))
        ref = jax.block_until_ready(ref_forward(x, params, dilation=dil))
        assert out.shape == (N, 4 * PLANES, H, W)
        max_err = float(jnp.max(jnp.abs(out - ref)))
        ref_scale = float(jnp.max(jnp.abs(ref)))
        # bf16 MXU operands (f32 accumulation) vs an f32 reference: allow a small
        # absolute + relative slack; real bugs produce O(1) relative errors.
        assert max_err <= 2e-2 + 3e-2 * ref_scale, (
            f"dilation={dil}: max_err={max_err} (ref scale {ref_scale})")

    print("KERNEL_OK")
</pallas_src>

<mosaic_0001>
module attributes {stable_mosaic.version = 11 : i64} {
  func.func @_bottleneck_kernel(%arg0: i32, %arg1: memref<1x256x128xf32, #tpu.memory_space<vmem>>, %arg2: memref<128x128xbf16, #tpu.memory_space<vmem>>, %arg3: memref<9x128x128xbf16, #tpu.memory_space<vmem>>, %arg4: memref<128x128xbf16, #tpu.memory_space<vmem>>, %arg5: memref<1x128xf32, #tpu.memory_space<vmem>>, %arg6: memref<1x128xf32, #tpu.memory_space<vmem>>, %arg7: memref<1x128xf32, #tpu.memory_space<vmem>>, %arg8: memref<1x256x128xf32, #tpu.memory_space<vmem>>, %arg9: memref<16x18x128xf32, #tpu.memory_space<vmem>>) attributes {dimension_semantics = [#tpu.dimension_semantics<parallel>], iteration_bounds = array<i64: 2>, scalar_prefetch = 0 : i64, scratch_operands = 1 : i64, tpu.core_type = #tpu.core_type<tc>, window_params = [{transform_indices = @transform_0, window_bounds = array<i64: 1, 256, 128>}, {pipeline_mode = #tpu.pipeline_mode<synchronous>, transform_indices = @transform_1, window_bounds = array<i64: 128, 128>}, {pipeline_mode = #tpu.pipeline_mode<synchronous>, transform_indices = @transform_2, window_bounds = array<i64: 9, 128, 128>}, {pipeline_mode = #tpu.pipeline_mode<synchronous>, transform_indices = @transform_3, window_bounds = array<i64: 128, 128>}, {pipeline_mode = #tpu.pipeline_mode<synchronous>, transform_indices = @transform_4, window_bounds = array<i64: 1, 128>}, {pipeline_mode = #tpu.pipeline_mode<synchronous>, transform_indices = @transform_5, window_bounds = array<i64: 1, 128>}, {pipeline_mode = #tpu.pipeline_mode<synchronous>, transform_indices = @transform_6, window_bounds = array<i64: 1, 128>}, {transform_indices = @transform_7, window_bounds = array<i64: 1, 256, 128>}]} {
    %c0 = arith.constant 0 : index
    %c0_0 = arith.constant 0 : index
    %c0_1 = arith.constant 0 : index
    %0 = vector.load %arg1[%c0, %c0_0, %c0_1] : memref<1x256x128xf32, #tpu.memory_space<vmem>>, vector<1x256x128xf32>
    %1 = vector.shape_cast %0 : vector<1x256x128xf32> to vector<256x128xf32>
    %c0_2 = arith.constant 0 : index
    %c0_3 = arith.constant 0 : index
    %2 = vector.load %arg5[%c0_2, %c0_3] : memref<1x128xf32, #tpu.memory_space<vmem>>, vector<1x128xf32>
    %c0_4 = arith.constant 0 : index
    %c0_5 = arith.constant 0 : index
    %3 = vector.load %arg6[%c0_4, %c0_5] : memref<1x128xf32, #tpu.memory_space<vmem>>, vector<1x128xf32>
    %c0_6 = arith.constant 0 : index
    %c0_7 = arith.constant 0 : index
    %4 = vector.load %arg7[%c0_6, %c0_7] : memref<1x128xf32, #tpu.memory_space<vmem>>, vector<1x128xf32>
    %5 = arith.truncf %1 : vector<256x128xf32> to vector<256x128xbf16>
    %c0_8 = arith.constant 0 : index
    %c0_9 = arith.constant 0 : index
    %6 = vector.load %arg2[%c0_8, %c0_9] : memref<128x128xbf16, #tpu.memory_space<vmem>>, vector<128x128xbf16>
    %cst = arith.constant dense<0.000000e+00> : vector<256x128xf32>
    %7 = tpu.matmul %5, %6, %cst {dimension_numbers = #tpu.dot_dimension_numbers<[1], [0], [0], [1], [0, 0, 1, 1], [], []>} : vector<256x128xbf16>, vector<128x128xbf16>, vector<256x128xf32> -> vector<256x128xf32>
    %8 = vector.broadcast %2 : vector<1x128xf32> to vector<256x128xf32>
    %9 = arith.addf %7, %8 : vector<256x128xf32>
    %cst_10 = arith.constant 0.000000e+00 : f32
    %10 = vector.broadcast %cst_10 : f32 to vector<256x128xf32>
    %11 = arith.maximumf %9, %10 : vector<256x128xf32>
    %cst_11 = arith.constant 0.000000e+00 : f32
    %12 = vector.broadcast %cst_11 : f32 to vector<16x1x128xf32>
    %c0_12 = arith.constant 0 : index
    %c0_13 = arith.constant 0 : index
    %c0_14 = arith.constant 0 : index
    %13 = vector.load %arg9[%c0_12, %c0_13, %c0_14] : memref<16x18x128xf32, #tpu.memory_space<vmem>>, vector<16x1x128xf32>
    tpu.vector_store %arg9[%c0_12, %c0_13, %c0_14], %12 {strides = array<i32>} : memref<16x18x128xf32, #tpu.memory_space<vmem>>, vector<16x1x128xf32>,
    %c0_15 = arith.constant 0 : index
    %c17 = arith.constant 17 : index
    %c0_16 = arith.constant 0 : index
    %14 = vector.load %arg9[%c0_15, %c17, %c0_16] : memref<16x18x128xf32, #tpu.memory_space<vmem>>, vector<16x1x128xf32>
    tpu.vector_store %arg9[%c0_15, %c17, %c0_16], %12 {strides = array<i32>} : memref<16x18x128xf32, #tpu.memory_space<vmem>>, vector<16x1x128xf32>,
    %15 = vector.shape_cast %11 : vector<256x128xf32> to vector<16x16x128xf32>
    %c0_17 = arith.constant 0 : index
    %c1 = arith.constant 1 : index
    %c0_18 = arith.constant 0 : index
    %16 = vector.load %arg9[%c0_17, %c1, %c0_18] : memref<16x18x128xf32, #tpu.memory_space<vmem>>, vector<16x16x128xf32>
    tpu.vector_store %arg9[%c0_17, %c1, %c0_18], %15 {strides = array<i32>} : memref<16x18x128xf32, #tpu.memory_space<vmem>>, vector<16x16x128xf32>,
    %c0_19 = arith.constant 0 : index
    %c0_20 = arith.constant 0 : index
    %c0_21 = arith.constant 0 : index
    %17 = vector.load %arg9[%c0_19, %c0_20, %c0_21] : memref<16x18x128xf32, #tpu.memory_space<vmem>>, vector<16x16x128xf32>
    %cst_22 = arith.constant 0.000000e+00 : f32
    %18 = vector.broadcast %cst_22 : f32 to vector<1x16x128xf32>
    %19 = vector.extract_strided_slice %17 {offsets = [0, 0, 0], sizes = [15, 16, 128], strides = [1, 1, 1]} : vector<16x16x128xf32> to vector<15x16x128xf32>
    %20 = tpu.concatenate %18, %19 in 0 : vector<1x16x128xf32>, vector<15x16x128xf32> -> vector<16x16x128xf32>
    %21 = vector.shape_cast %20 : vector<16x16x128xf32> to vector<256x128xf32>
    %22 = arith.truncf %21 : vector<256x128xf32> to vector<256x128xbf16>
    %c0_23 = arith.constant 0 : index
    %c0_24 = arith.constant 0 : index
    %c0_25 = arith.constant 0 : index
    %23 = vector.load %arg3[%c0_23, %c0_24, %c0_25] : memref<9x128x128xbf16, #tpu.memory_space<vmem>>, vector<1x128x128xbf16>
    %24 = vector.shape_cast %23 : vector<1x128x128xbf16> to vector<128x128xbf16>
    %cst_26 = arith.constant dense<0.000000e+00> : vector<256x128xf32>
    %25 = tpu.matmul %22, %24, %cst_26 {dimension_numbers = #tpu.dot_dimension_numbers<[1], [0], [0], [1], [0, 0, 1, 1], [], []>} : vector<256x128xbf16>, vector<128x128xbf16>, vector<256x128xf32> -> vector<256x128xf32>
    %26 = vector.shape_cast %17 : vector<16x16x128xf32> to vector<256x128xf32>
    %27 = arith.truncf %26 : vector<256x128xf32> to vector<256x128xbf16>
    %c3 = arith.constant 3 : index
    %c0_27 = arith.constant 0 : index
    %c0_28 = arith.constant 0 : index
    %28 = vector.load %arg3[%c3, %c0_27, %c0_28] : memref<9x128x128xbf16, #tpu.memory_space<vmem>>, vector<1x128x128xbf16>
    %29 = vector.shape_cast %28 : vector<1x128x128xbf16> to vector<128x128xbf16>
    %cst_29 = arith.constant dense<0.000000e+00> : vector<256x128xf32>
    %30 = tpu.matmul %27, %29, %cst_29 {dimension_numbers = #tpu.dot_dimension_numbers<[1], [0], [0], [1], [0, 0, 1, 1], [], []>} : vector<256x128xbf16>, vector<128x128xbf16>, vector<256x128xf32> -> vector<256x128xf32>
    %31 = arith.addf %25, %30 : vector<256x128xf32>
    %32 = vector.extract_strided_slice %17 {offsets = [1, 0, 0], sizes = [15, 16, 128], strides = [1, 1, 1]} : vector<16x16x128xf32> to vector<15x16x128xf32>
    %cst_30 = arith.constant 0.000000e+00 : f32
    %33 = vector.broadcast %cst_30 : f32 to vector<1x16x128xf32>
    %34 = tpu.concatenate %32, %33 in 0 : vector<15x16x128xf32>, vector<1x16x128xf32> -> vector<16x16x128xf32>
    %35 = vector.shape_cast %34 : vector<16x16x128xf32> to vector<256x128xf32>
    %36 = arith.truncf %35 : vector<256x128xf32> to vector<256x128xbf16>
    %c6 = arith.constant 6 : index
    %c0_31 = arith.constant 0 : index
    %c0_32 = arith.constant 0 : index
    %37 = vector.load %arg3[%c6, %c0_31, %c0_32] : memref<9x128x128xbf16, #tpu.memory_space<vmem>>, vector<1x128x128xbf16>
    %38 = vector.shape_cast %37 : vector<1x128x128xbf16> to vector<128x128xbf16>
    %cst_33 = arith.constant dense<0.000000e+00> : vector<256x128xf32>
    %39 = tpu.matmul %36, %38, %cst_33 {dimension_numbers = #tpu.dot_dimension_numbers<[1], [0], [0], [1], [0, 0, 1, 1], [], []>} : vector<256x128xbf16>, vector<128x128xbf16>, vector<256x128xf32> -> vector<256x128xf32>
    %40 = arith.addf %31, %39 : vector<256x128xf32>
    %c0_34 = arith.constant 0 : index
    %c1_35 = arith.constant 1 : index
    %c0_36 = arith.constant 0 : index
    %41 = vector.load %arg9[%c0_34, %c1_35, %c0_36] : memref<16x18x128xf32, #tpu.memory_space<vmem>>, vector<16x16x128xf32>
    %cst_37 = arith.constant 0.000000e+00 : f32
    %42 = vector.broadcast %cst_37 : f32 to vector<1x16x128xf32>
    %43 = vector.extract_strided_slice %41 {offsets = [0, 0, 0], sizes = [15, 16, 128], strides = [1, 1, 1]} : vector<16x16x128xf32> to vector<15x16x128xf32>
    %44 = tpu.concatenate %42, %43 in 0 : vector<1x16x128xf32>, vector<15x16x128xf32> -> vector<16x16x128xf32>
    %45 = vector.shape_cast %44 : vector<16x16x128xf32> to vector<256x128xf32>
    %46 = arith.truncf %45 : vector<256x128xf32> to vector<256x128xbf16>
    %c1_38 = arith.constant 1 : index
    %c0_39 = arith.constant 0 : index
    %c0_40 = arith.constant 0 : index
    %47 = vector.load %arg3[%c1_38, %c0_39, %c0_40] : memref<9x128x128xbf16, #tpu.memory_space<vmem>>, vector<1x128x128xbf16>
    %48 = vector.shape_cast %47 : vector<1x128x128xbf16> to vector<128x128xbf16>
    %cst_41 = arith.constant dense<0.000000e+00> : vector<256x128xf32>
    %49 = tpu.matmul %46, %48, %cst_41 {dimension_numbers = #tpu.dot_dimension_numbers<[1], [0], [0], [1], [0, 0, 1, 1], [], []>} : vector<256x128xbf16>, vector<128x128xbf16>, vector<256x128xf32> -> vector<256x128xf32>
    %50 = arith.addf %40, %49 : vector<256x128xf32>
    %51 = vector.shape_cast %41 : vector<16x16x128xf32> to vector<256x128xf32>
    %52 = arith.truncf %51 : vector<256x128xf32> to vector<256x128xbf16>
    %c4 = arith.constant 4 : index
    %c0_42 = arith.constant 0 : index
    %c0_43 = arith.constant 0 : index
    %53 = vector.load %arg3[%c4, %c0_42, %c0_43] : memref<9x128x128xbf16, #tpu.memory_space<vmem>>, vector<1x128x128xbf16>
    %54 = vector.shape_cast %53 : vector<1x128x128xbf16> to vector<128x128xbf16>
    %cst_44 = arith.constant dense<0.000000e+00> : vector<256x128xf32>
    %55 = tpu.matmul %52, %54, %cst_44 {dimension_numbers = #tpu.dot_dimension_numbers<[1], [0], [0], [1], [0, 0, 1, 1], [], []>} : vector<256x128xbf16>, vector<128x128xbf16>, vector<256x128xf32> -> vector<256x128xf32>
    %56 = arith.addf %50, %55 : vector<256x128xf32>
    %57 = vector.extract_strided_slice %41 {offsets = [1, 0, 0], sizes = [15, 16, 128], strides = [1, 1, 1]} : vector<16x16x128xf32> to vector<15x16x128xf32>
    %cst_45 = arith.constant 0.000000e+00 : f32
    %58 = vector.broadcast %cst_45 : f32 to vector<1x16x128xf32>
    %59 = tpu.concatenate %57, %58 in 0 : vector<15x16x128xf32>, vector<1x16x128xf32> -> vector<16x16x128xf32>
    %60 = vector.shape_cast %59 : vector<16x16x128xf32> to vector<256x128xf32>
    %61 = arith.truncf %60 : vector<256x128xf32> to vector<256x128xbf16>
    %c7 = arith.constant 7 : index
    %c0_46 = arith.constant 0 : index
    %c0_47 = arith.constant 0 : index
    %62 = vector.load %arg3[%c7, %c0_46, %c0_47] : memref<9x128x128xbf16, #tpu.memory_space<vmem>>, vector<1x128x128xbf16>
    %63 = vector.shape_cast %62 : vector<1x128x128xbf16> to vector<128x128xbf16>
    %cst_48 = arith.constant dense<0.000000e+00> : vector<256x128xf32>
    %64 = tpu.matmul %61, %63, %cst_48 {dimension_numbers = #tpu.dot_dimension_numbers<[1], [0], [0], [1], [0, 0, 1, 1], [], []>} : vector<256x128xbf16>, vector<128x128xbf16>, vector<256x128xf32> -> vector<256x128xf32>
    %65 = arith.addf %56, %64 : vector<256x128xf32>
    %c0_49 = arith.constant 0 : index
    %c2 = arith.constant 2 : index
    %c0_50 = arith.constant 0 : index
    %66 = vector.load %arg9[%c0_49, %c2, %c0_50] : memref<16x18x128xf32, #tpu.memory_space<vmem>>, vector<16x16x128xf32>
    %cst_51 = arith.constant 0.000000e+00 : f32
    %67 = vector.broadcast %cst_51 : f32 to vector<1x16x128xf32>
    %68 = vector.extract_strided_slice %66 {offsets = [0, 0, 0], sizes = [15, 16, 128], strides = [1, 1, 1]} : vector<16x16x128xf32> to vector<15x16x128xf32>
    %69 = tpu.concatenate %67, %68 in 0 : vector<1x16x128xf32>, vector<15x16x128xf32> -> vector<16x16x128xf32>
    %70 = vector.shape_cast %69 : vector<16x16x128xf32> to vector<256x128xf32>
    %71 = arith.truncf %70 : vector<256x128xf32> to vector<256x128xbf16>
    %c2_52 = arith.constant 2 : index
    %c0_53 = arith.constant 0 : index
    %c0_54 = arith.constant 0 : index
    %72 = vector.load %arg3[%c2_52, %c0_53, %c0_54] : memref<9x128x128xbf16, #tpu.memory_space<vmem>>, vector<1x128x128xbf16>
    %73 = vector.shape_cast %72 : vector<1x128x128xbf16> to vector<128x128xbf16>
    %cst_55 = arith.constant dense<0.000000e+00> : vector<256x128xf32>
    %74 = tpu.matmul %71, %73, %cst_55 {dimension_numbers = #tpu.dot_dimension_numbers<[1], [0], [0], [1], [0, 0, 1, 1], [], []>} : vector<256x128xbf16>, vector<128x128xbf16>, vector<256x128xf32> -> vector<256x128xf32>
    %75 = arith.addf %65, %74 : vector<256x128xf32>
    %76 = vector.shape_cast %66 : vector<16x16x128xf32> to vector<256x128xf32>
    %77 = arith.truncf %76 : vector<256x128xf32> to vector<256x128xbf16>
    %c5 = arith.constant 5 : index
    %c0_56 = arith.constant 0 : index
    %c0_57 = arith.constant 0 : index
    %78 = vector.load %arg3[%c5, %c0_56, %c0_57] : memref<9x128x128xbf16, #tpu.memory_space<vmem>>, vector<1x128x128xbf16>
    %79 = vector.shape_cast %78 : vector<1x128x128xbf16> to vector<128x128xbf16>
    %cst_58 = arith.constant dense<0.000000e+00> : vector<256x128xf32>
    %80 = tpu.matmul %77, %79, %cst_58 {dimension_numbers = #tpu.dot_dimension_numbers<[1], [0], [0], [1], [0, 0, 1, 1], [], []>} : vector<256x128xbf16>, vector<128x128xbf16>, vector<256x128xf32> -> vector<256x128xf32>
    %81 = arith.addf %75, %80 : vector<256x128xf32>
    %82 = vector.extract_strided_slice %66 {offsets = [1, 0, 0], sizes = [15, 16, 128], strides = [1, 1, 1]} : vector<16x16x128xf32> to vector<15x16x128xf32>
    %cst_59 = arith.constant 0.000000e+00 : f32
    %83 = vector.broadcast %cst_59 : f32 to vector<1x16x128xf32>
    %84 = tpu.concatenate %82, %83 in 0 : vector<15x16x128xf32>, vector<1x16x128xf32> -> vector<16x16x128xf32>
    %85 = vector.shape_cast %84 : vector<16x16x128xf32> to vector<256x128xf32>
    %86 = arith.truncf %85 : vector<256x128xf32> to vector<256x128xbf16>
    %c8 = arith.constant 8 : index
    %c0_60 = arith.constant 0 : index
    %c0_61 = arith.constant 0 : index
    %87 = vector.load %arg3[%c8, %c0_60, %c0_61] : memref<9x128x128xbf16, #tpu.memory_space<vmem>>, vector<1x128x128xbf16>
    %88 = vector.shape_cast %87 : vector<1x128x128xbf16> to vector<128x128xbf16>
    %cst_62 = arith.constant dense<0.000000e+00> : vector<256x128xf32>
    %89 = tpu.matmul %86, %88, %cst_62 {dimension_numbers = #tpu.dot_dimension_numbers<[1], [0], [0], [1], [0, 0, 1, 1], [], []>} : vector<256x128xbf16>, vector<128x128xbf16>, vector<256x128xf32> -> vector<256x128xf32>
    %90 = arith.addf %81, %89 : vector<256x128xf32>
    %91 = vector.broadcast %3 : vector<1x128xf32> to vector<256x128xf32>
    %92 = arith.addf %90, %91 : vector<256x128xf32>
    %cst_63 = arith.constant 0.000000e+00 : f32
    %93 = vector.broadcast %cst_63 : f32 to vector<256x128xf32>
    %94 = arith.maximumf %92, %93 : vector<256x128xf32>
    %95 = arith.truncf %94 : vector<256x128xf32> to vector<256x128xbf16>
    %c0_64 = arith.constant 0 : index
    %c0_65 = arith.constant 0 : index
    %96 = vector.load %arg4[%c0_64, %c0_65] : memref<128x128xbf16, #tpu.memory_space<vmem>>, vector<128x128xbf16>
    %cst_66 = arith.constant dense<0.000000e+00> : vector<256x128xf32>
    %97 = tpu.matmul %95, %96, %cst_66 {dimension_numbers = #tpu.dot_dimension_numbers<[1], [0], [0], [1], [0, 0, 1, 1], [], []>} : vector<256x128xbf16>, vector<128x128xbf16>, vector<256x128xf32> -> vector<256x128xf32>
    %98 = vector.broadcast %4 : vector<1x128xf32> to vector<256x128xf32>
    %99 = arith.addf %97, %98 : vector<256x128xf32>
    %100 = arith.addf %99, %1 : vector<256x128xf32>
    %cst_67 = arith.constant 0.000000e+00 : f32
    %101 = vector.broadcast %cst_67 : f32 to vector<256x128xf32>
    %102 = arith.maximumf %100, %101 : vector<256x128xf32>
    %c0_68 = arith.constant 0 : index
    %c0_69 = arith.constant 0 : index
    %c0_70 = arith.constant 0 : index
    %103 = vector.load %arg8[%c0_68, %c0_69, %c0_70] : memref<1x256x128xf32, #tpu.memory_space<vmem>>, vector<1x256x128xf32>
    %104 = vector.shape_cast %103 : vector<1x256x128xf32> to vector<256x128xf32>
    %105 = vector.shape_cast %102 : vector<256x128xf32> to vector<1x256x128xf32>
    tpu.vector_store %arg8[%c0_68, %c0_69, %c0_70], %105 {strides = array<i32>} : memref<1x256x128xf32, #tpu.memory_space<vmem>>, vector<1x256x128xf32>,
    return
  }
  func.func @transform_0(%arg0: i32) -> (i32, i32, i32) {
    %c0_i32 = arith.constant 0 : i32
    %c0_i32_0 = arith.constant 0 : i32
    %c0_i32_1 = arith.constant 0 : i32
    return %arg0, %c0_i32, %c0_i32_0 : i32, i32, i32
  }
  func.func @transform_1(%arg0: i32) -> (i32, i32) {
    %c0_i32 = arith.constant 0 : i32
    %c0_i32_0 = arith.constant 0 : i32
    %c0_i32_1 = arith.constant 0 : i32
    return %c0_i32, %c0_i32_0 : i32, i32
  }
  func.func @transform_2(%arg0: i32) -> (i32, i32, i32) {
    %c0_i32 = arith.constant 0 : i32
    %c0_i32_0 = arith.constant 0 : i32
    %c0_i32_1 = arith.constant 0 : i32
    %c0_i32_2 = arith.constant 0 : i32
    return %c0_i32, %c0_i32_0, %c0_i32_1 : i32, i32, i32
  }
  func.func @transform_3(%arg0: i32) -> (i32, i32) {
    %c0_i32 = arith.constant 0 : i32
    %c0_i32_0 = arith.constant 0 : i32
    %c0_i32_1 = arith.constant 0 : i32
    return %c0_i32, %c0_i32_0 : i32, i32
  }
  func.func @transform_4(%arg0: i32) -> (i32, i32) {
    %c0_i32 = arith.constant 0 : i32
    %c0_i32_0 = arith.constant 0 : i32
    %c0_i32_1 = arith.constant 0 : i32
    return %c0_i32, %c0_i32_0 : i32, i32
  }
  func.func @transform_5(%arg0: i32) -> (i32, i32) {
    %c0_i32 = arith.constant 0 : i32
    %c0_i32_0 = arith.constant 0 : i32
    %c0_i32_1 = arith.constant 0 : i32
    return %c0_i32, %c0_i32_0 : i32, i32
  }
  func.func @transform_6(%arg0: i32) -> (i32, i32) {
    %c0_i32 = arith.constant 0 : i32
    %c0_i32_0 = arith.constant 0 : i32
    %c0_i32_1 = arith.constant 0 : i32
    return %c0_i32, %c0_i32_0 : i32, i32
  }
  func.func @transform_7(%arg0: i32) -> (i32, i32, i32) {
    %c0_i32 = arith.constant 0 : i32
    %c0_i32_0 = arith.constant 0 : i32
    %c0_i32_1 = arith.constant 0 : i32
    return %arg0, %c0_i32, %c0_i32_0 : i32, i32, i32
  }
}

</mosaic_0001>

<bundles_post_ra>
// kernel: bottleneck_forward.1
= control target key start
LH: loop header
LB: loop body
LE: loop exit
PB: predicated region body
PF: predicated region fallthrough
CT: control target
= control target key end

     0   :  { %s5004_s24 = smov 0   ;;  %s5852_s0 = inlined_call_operand.vmem [shape: f32[2,256,128], index: 0, kind: input, shape index: {}]   ;;  %s5853_s1 = inlined_call_operand.vmem [shape: bf16[128,128], index: 1, kind: input, shape index: {}]   ;;  %s5854_s2 = inlined_call_operand.vmem [shape: bf16[9,128,128], index: 2, kind: input, shape index: {}]   ;;  %s5855_s3 = inlined_call_operand.vmem [shape: bf16[128,128], index: 3, kind: input, shape index: {}]   ;;  %s5856_s4 = inlined_call_operand.vmem [shape: f32[1,128], index: 4, kind: input, shape index: {}]   ;;  %s5857_s5 = inlined_call_operand.vmem [shape: f32[1,128], index: 5, kind: input, shape index: {}]   ;;  %s5858_s6 = inlined_call_operand.vmem [shape: f32[1,128], index: 6, kind: input, shape index: {}]   ;;  %s5859_s7 = inlined_call_operand.vmem [shape: f32[2,256,128], index: 7, kind: output, shape index: {}]  }
   0x1 LB: > { %s3528_s25 = sadd.s32 4294967295, %s4960_s24   ;;  %p3532_p0 = scmp.ge.s32.totalorder %s4960_s24, 1  ;;  %s4960_s24 = sphi %s5004_s24, %s17_s24  }
   0x2   : > { %p237_p1 = scmp.lt.s32.totalorder %s4960_s24, 3 }
   0x4   : > { %p238_p2 = pnand %p3532_p0, %p237_p1 }
   0x5   : > { %v4834_v0 = vld [vmem:[%s5853_s1] sm:$0xff] (!%p238_p2)   ;;  %p269_p3 = scmp.lt.s32.totalorder (!%p238_p2), %s3528_s25, 1  ;;  %v4835_v1 = vld [vmem:[%s5853_s1 + $0x8] sm:$0xff] (!%p238_p2)   ;;  %v4836_v2 = vld [vmem:[%s5853_s1 + $0x10] sm:$0xff] (!%p238_p2)   ;;  %v4962_v62 = vmov (!%p238_p2), 0.0  }
   0x6   : > { %241 = sbr.rel (%p238_p2) target bundleno = 1081 (0x439), region = 48  ;;  %4024 = vmatprep.subr.bf16.mxu0 (!%p238_p2), %v4834_v0  ;;  %v4837_v3 = vld [vmem:[%s5853_s1 + $0x18] sm:$0xff] (!%p238_p2)   ;;  %v4838_v7 = vld [vmem:[%s5853_s1 + $0x20] sm:$0xff] (!%p238_p2)   ;;  %v4839_v8 = vld [vmem:[%s5853_s1 + $0x28] sm:$0xff] (!%p238_p2)   ;;  %594 = vst [vmem:[#allocation2] sm:$0x1] (!%p238_p2), %v4962_v62 }
   0x7   : > { %4025 = vmatpush3.bf16.msra.mxu0 (!%p238_p2), %v4834_v0  ;;  %v4840_v9 = vld [vmem:[%s5853_s1 + $0x30] sm:$0xff] (!%p238_p2)   ;;  %v4841_v10 = vld [vmem:[%s5853_s1 + $0x38] sm:$0xff] (!%p238_p2)   ;;  %v4842_v15 = vld [vmem:[%s5854_s2 + $0xc0] sm:$0xff] (!%p238_p2)   ;;  %595 = vst [vmem:[#allocation2 + $0x18] sm:$0x1] (!%p238_p2), %v4962_v62 }
   0x8   : > { %4026 = vmatprep.subr.bf16.mxu0 (!%p238_p2), %v4835_v1  ;;  %v4843_v17 = vld [vmem:[%s5854_s2 + $0xc8] sm:$0xff] (!%p238_p2)   ;;  %v4844_v23 = vld [vmem:[%s5854_s2 + $0xd0] sm:$0xff] (!%p238_p2)   ;;  %v4845_v25 = vld [vmem:[%s5854_s2 + $0xd8] sm:$0xff] (!%p238_p2)   ;;  %596 = vst [vmem:[#allocation2 + $0x30] sm:$0x1] (!%p238_p2), %v4962_v62 }
   0x9   : > { %v4846_v60 = vld [vmem:[%s5854_s2 + $0xe0] sm:$0xff] (!%p238_p2)   ;;  %v4847_v61 = vld [vmem:[%s5854_s2 + $0xe8] sm:$0xff] (!%p238_p2)   ;;  %597 = vst [vmem:[#allocation2 + $0x48] sm:$0x1] (!%p238_p2), %v4962_v62  ;;  %598 = vst [vmem:[#allocation2 + $0x60] sm:$0x1] (!%p238_p2), %v4962_v62 }
   0xa   : > { %599 = vst [vmem:[#allocation2 + $0x78] sm:$0x1] (!%p238_p2), %v4962_v62  ;;  %600 = vst [vmem:[#allocation2 + $0x90] sm:$0x1] (!%p238_p2), %v4962_v62  ;;  %v5099_v63 = vld [vmem:[%s5854_s2 + $0x40] sm:$0xff] (!%p238_p2)   ;;  %v4848_v0 = vld [vmem:[%s5854_s2 + $0xf0] sm:$0xff] (!%p238_p2)  }
   0xb   : > { %4027 = vmatpush3.bf16.msra.mxu0 (!%p238_p2), %v4835_v1  ;;  %601 = vst [vmem:[#allocation2 + $0xa8] sm:$0x1] (!%p238_p2), %v4962_v62  ;;  %602 = vst [vmem:[#allocation2 + $0xc0] sm:$0x1] (!%p238_p2), %v4962_v62  ;;  %4552 = vmatprep.subr.bf16.mxu1 (!%p238_p2), %v5099_v63  ;;  %v5109_v1 = vld [vmem:[%s5854_s2 + $0x48] sm:$0xff] (!%p238_p2)  }
   0xc   : > { %4028 = vmatprep.subr.bf16.mxu0 (!%p238_p2), %v4836_v2  ;;  %603 = vst [vmem:[#allocation2 + $0xd8] sm:$0x1] (!%p238_p2), %v4962_v62  ;;  %604 = vst [vmem:[#allocation2 + $0xf0] sm:$0x1] (!%p238_p2), %v4962_v62  ;;  %4560 = vmatpush3.bf16.msra.mxu1 (!%p238_p2), %v5099_v63 }
   0xd   : > { %s5861_s25 = smov (!%p269_p3, %s3528_s25), 1  ;;  %605 = vst [vmem:[#allocation2 + $0x108] sm:$0x1] %v4962_v62  ;;  %606 = vst [vmem:[#allocation2 + $0x120] sm:$0x1] %v4962_v62  ;;  %4553 = vmatprep.subr.bf16.mxu1 %v5109_v1 }
   0xe   : > { %s3758_s9 = sshll.u32 %s5861_s25, 8  ;;  %607 = vst [vmem:[#allocation2 + $0x138] sm:$0x1] %v4962_v62  ;;  %608 = vst [vmem:[#allocation2 + $0x150] sm:$0x1] %v4962_v62 }
   0xf   : > { %s5029_s12 = scalar_lea.vmem %s5852_s0, %s3758_s9  ;;  %4029 = vmatpush3.bf16.msra.mxu0 %v4836_v2  ;;  %609 = vst [vmem:[#allocation2 + $0x168] sm:$0x1] %v4962_v62  ;;  %610 = vst [vmem:[#allocation2 + $0x11] sm:$0x1] %v4962_v62  ;;  %v4849_v2 = vld [vmem:[%s5854_s2 + $0xf8] sm:$0xff]   ;;  %s5755_s20 = scalar_lea.vmem %s5859_s7, %s3758_s9 }
  0x10   : > { %v280_v4 = vld [vmem:[%s5029_s12] sm:$0xff]  ;;  %v281_v5 = vld [vmem:[%s5029_s12 + $0x8] sm:$0xff]  ;;  %4030 = vmatprep.subr.bf16.mxu0 %v4837_v3  ;;  %v282_v11 = vld [vmem:[%s5029_s12 + $0x10] sm:$0xff]  ;;  %611 = vst [vmem:[#allocation2 + $0x29] sm:$0x1] %v4962_v62  ;;  %4561 = vmatpush3.bf16.msra.mxu1 %v5109_v1 }
  0x11   : > { %v315_v6 = vpack.c.bf16 %v281_v5, %v280_v4  ;;  %v283_v12 = vld [vmem:[%s5029_s12 + $0x18] sm:$0xff]  ;;  %v284_v13 = vld [vmem:[%s5029_s12 + $0x20] sm:$0xff]  ;;  %v285_v14 = vld [vmem:[%s5029_s12 + $0x28] sm:$0xff]  ;;  %612 = vst [vmem:[#allocation2 + $0x41] sm:$0x1] %v4962_v62 }
  0x12   : > { %v316_v16 = vpack.c.bf16 %v283_v12, %v282_v11  ;;  %v317_v18 = vpack.c.bf16 %v285_v14, %v284_v13  ;;  %v286_v19 = vld [vmem:[%s5029_s12 + $0x30] sm:$0xff]  ;;  %v287_v20 = vld [vmem:[%s5029_s12 + $0x38] sm:$0xff]  ;;  %v288_v21 = vld [vmem:[%s5029_s12 + $0x40] sm:$0xff]  ;;  %613 = vst [vmem:[#allocation2 + $0x59] sm:$0x1] %v4962_v62 }
  0x13   : > { %4040 = vmatprep.mubr.bf16.mxu0 %v315_v6  ;;  %4031 = vmatpush3.bf16.msra.mxu0 %v4837_v3  ;;  %v289_v22 = vld [vmem:[%s5029_s12 + $0x48] sm:$0xff]  ;;  %v318_v24 = vpack.c.bf16 %v287_v20, %v286_v19  ;;  %v290_v27 = vld [vmem:[%s5029_s12 + $0x50] sm:$0xff]  ;;  %v291_v28 = vld [vmem:[%s5029_s12 + $0x58] sm:$0xff]  ;;  %614 = vst [vmem:[#allocation2 + $0x71] sm:$0x1] %v4962_v62 }
  0x14   : > { %4032 = vmatprep.subr.bf16.mxu0 %v4838_v7  ;;  %v319_v26 = vpack.c.bf16 %v289_v22, %v288_v21  ;;  %v292_v29 = vld [vmem:[%s5029_s12 + $0x60] sm:$0xff]  ;;  %v293_v30 = vld [vmem:[%s5029_s12 + $0x68] sm:$0xff]  ;;  %v320_v31 = vpack.c.bf16 %v291_v28, %v290_v27  ;;  %v294_v33 = vld [vmem:[%s5029_s12 + $0x70] sm:$0xff]  ;;  %615 = vst [vmem:[#allocation2 + $0x89] sm:$0x1] %v4962_v62 }
  0x15   : > { %v321_v32 = vpack.c.bf16 %v293_v30, %v292_v29  ;;  %v295_v34 = vld [vmem:[%s5029_s12 + $0x78] sm:$0xff]  ;;  %v296_v35 = vld [vmem:[%s5029_s12 + $0x80] sm:$0xff]  ;;  %v297_v36 = vld [vmem:[%s5029_s12 + $0x88] sm:$0xff]  ;;  %616 = vst [vmem:[#allocation2 + $0xa1] sm:$0x1] %v4962_v62 }
  0x16   : > { %v322_v37 = vpack.c.bf16 %v295_v34, %v294_v33  ;;  %v323_v38 = vpack.c.bf16 %v297_v36, %v296_v35  ;;  %v298_v39 = vld [vmem:[%s5029_s12 + $0x90] sm:$0xff]  ;;  %v299_v40 = vld [vmem:[%s5029_s12 + $0x98] sm:$0xff]  ;;  %v300_v41 = vld [vmem:[%s5029_s12 + $0xa0] sm:$0xff]  ;;  %617 = vst [vmem:[#allocation2 + $0xb9] sm:$0x1] %v4962_v62 }
  0x17   : > { %4033 = vmatpush3.bf16.msra.mxu0 %v4838_v7  ;;  %v301_v42 = vld [vmem:[%s5029_s12 + $0xa8] sm:$0xff]  ;;  %v324_v43 = vpack.c.bf16 %v299_v40, %v298_v39  ;;  %v302_v45 = vld [vmem:[%s5029_s12 + $0xb0] sm:$0xff]  ;;  %v303_v46 = vld [vmem:[%s5029_s12 + $0xb8] sm:$0xff]  ;;  %618 = vst [vmem:[#allocation2 + $0xd1] sm:$0x1] %v4962_v62 }
  0x18   : > { %4034 = vmatprep.subr.bf16.mxu0 %v4839_v8  ;;  %v325_v44 = vpack.c.bf16 %v301_v42, %v300_v41  ;;  %v304_v47 = vld [vmem:[%s5029_s12 + $0xc0] sm:$0xff]  ;;  %v305_v48 = vld [vmem:[%s5029_s12 + $0xc8] sm:$0xff]  ;;  %v326_v49 = vpack.c.bf16 %v303_v46, %v302_v45  ;;  %v306_v51 = vld [vmem:[%s5029_s12 + $0xd0] sm:$0xff]  ;;  %619 = vst [vmem:[#allocation2 + $0xe9] sm:$0x1] %v4962_v62 }
  0x19   : > { %v327_v50 = vpack.c.bf16 %v305_v48, %v304_v47  ;;  %v307_v52 = vld [vmem:[%s5029_s12 + $0xd8] sm:$0xff]  ;;  %v308_v53 = vld [vmem:[%s5029_s12 + $0xe0] sm:$0xff]  ;;  %v309_v54 = vld [vmem:[%s5029_s12 + $0xe8] sm:$0xff]  ;;  %620 = vst [vmem:[#allocation2 + $0x101] sm:$0x1] %v4962_v62 }
  0x1a   : > { %v328_v55 = vpack.c.bf16 %v307_v52, %v306_v51  ;;  %v329_v56 = vpack.c.bf16 %v309_v54, %v308_v53  ;;  %v310_v57 = vld [vmem:[%s5029_s12 + $0xf0] sm:$0xff]  ;;  %v311_v58 = vld [vmem:[%s5029_s12 + $0xf8] sm:$0xff]  ;;  %621 = vst [vmem:[#allocation2 + $0x119] sm:$0x1] %v4962_v62  ;;  %622 = vst [vmem:[#allocation2 + $0x131] sm:$0x1] %v4962_v62 }
  0x1b   : > { %4035 = vmatpush3.bf16.msra.mxu0 %v4839_v8  ;;  %v330_v59 = vpack.c.bf16 %v311_v58, %v310_v57  ;;  %623 = vst [vmem:[#allocation2 + $0x149] sm:$0x1] %v4962_v62  ;;  %624 = vst [vmem:[#allocation2 + $0x161] sm:$0x1] %v4962_v62  ;;  %v5119_v3 = vld [vmem:[%s5854_s2 + $0x50] sm:$0xff]   ;;  %v5126_v4 = vld [vmem:[%s5854_s2 + $0x58] sm:$0xff]  }
  0x1c   : > { %4036 = vmatprep.subr.bf16.mxu0 %v4840_v9  ;;  %625 = vst [vmem:[#allocation2 + $0x179] sm:$0x1] %v4962_v62  ;;  %4554 = vmatprep.subr.bf16.mxu1 %v5119_v3  ;;  %v5133_v5 = vld [vmem:[%s5854_s2 + $0x60] sm:$0xff]   ;;  %v5140_v6 = vld [vmem:[%s5854_s2 + $0x68] sm:$0xff]   ;;  %v5147_v7 = vld [vmem:[%s5854_s2 + $0x70] sm:$0xff]  }
  0x1d   : > { %4562 = vmatpush3.bf16.msra.mxu1 %v5119_v3  ;;  %v5154_v8 = vld [vmem:[%s5854_s2 + $0x78] sm:$0xff]   ;;  %v5170_v11 = vld [vmem:[%s5856_s4] ss:$0 sm:$0xff]  ;;  %v4863_v58 = vld [vmem:[%s5854_s2 + $0x10] sm:$0xff]  }
  0x1e   : > { %4555 = vmatprep.subr.bf16.mxu1 %v5126_v4 }
  0x1f   : > { %4037 = vmatpush3.bf16.msra.mxu0 %v4840_v9  ;;  %v5161_v9 = vld [vmem:[%s5854_s2 + $0x100] sm:$0xff]  }
  0x20   : > { %4038 = vmatprep.subr.bf16.mxu0 %v4841_v10 }
  0x21   : > { %4563 = vmatpush3.bf16.msra.mxu1 %v5126_v4 }
  0x22   : > { %4556 = vmatprep.subr.bf16.mxu1 %v5133_v5 }
  0x23   : > { %4039 = vmatpush3.bf16.msra.mxu0 %v4841_v10  ;;  %v4859_v10 = vld [vmem:[%s5854_s2] sm:$0xff]  }
  0x24   : > { %4072 = vmatprep.subr.bf16.mxu0 %v4842_v15 }
  0x25   : > { %4564 = vmatpush3.bf16.msra.mxu1 %v5133_v5 }
  0x26   : > { %4041 = vmatmul.mubr.bf16.vlgmr.msra.gmra.mrb[0].mxu0 %v316_v16  ;;  %4557 = vmatprep.subr.bf16.mxu1 %v5140_v6 }
  0x27   : > { %4044 = vmatprep.mubr.bf16.mxu0 %v317_v18  ;;  %4073 = vmatpush3.bf16.msra.mxu0 %v4842_v15 }
  0x28   : > { %4074 = vmatprep.subr.bf16.mxu0 %v4843_v17 }
  0x29   : > { %4565 = vmatpush3.bf16.msra.mxu1 %v5140_v6 }
  0x2a   : > { %4558 = vmatprep.subr.bf16.mxu1 %v5147_v7 }
  0x2b   : > { %4075 = vmatpush3.bf16.msra.mxu0 %v4843_v17 }
  0x2c   : > { %4076 = vmatprep.subr.bf16.mxu0 %v4844_v23 }
  0x2d   : > { %4566 = vmatpush3.bf16.msra.mxu1 %v5147_v7 }
  0x2e   : > { %4045 = vmatmul.mubr.bf16.gmra.mrb[4].mxu0 %v318_v24  ;;  %4559 = vmatprep.subr.bf16.mxu1 %v5154_v8 }
  0x2f   : > { %4048 = vmatprep.mubr.bf16.mxu0 %v319_v26  ;;  %4077 = vmatpush3.bf16.msra.mxu0 %v4844_v23 }
  0x30   : > { %4078 = vmatprep.subr.bf16.mxu0 %v4845_v25 }
  0x31   : > { %4567 = vmatpush3.bf16.msra.mxu1 %v5154_v8 }
  0x32   : > { %4264 = vmatprep.subr.bf16.mxu1 %v5161_v9 }
  0x33   : > { %4079 = vmatpush3.bf16.msra.mxu0 %v4845_v25 }
  0x34   : > { %4080 = vmatprep.subr.bf16.mxu0 %v4846_v60 }
  0x36   : > { %4049 = vmatmul.mubr.bf16.gmra.mrb[8].mxu0 %v320_v31 }
  0x37   : > { %4052 = vmatprep.mubr.bf16.mxu0 %v321_v32  ;;  %4081 = vmatpush3.bf16.msra.mxu0 %v4846_v60 }
  0x38   : > { %4082 = vmatprep.subr.bf16.mxu0 %v4847_v61 }
  0x3b   : > { %4083 = vmatpush3.bf16.msra.mxu0 %v4847_v61 }
  0x3c   : > { %4084 = vmatprep.subr.bf16.mxu0 %v4848_v0 }
  0x3e   : > { %4053 = vmatmul.mubr.bf16.gmra.mrb[12].mxu0 %v322_v37 }
  0x3f   : > { %4056 = vmatprep.mubr.bf16.mxu0 %v323_v38  ;;  %4085 = vmatpush3.bf16.msra.mxu0 %v4848_v0 }
  0x40   : > { %4086 = vmatprep.subr.bf16.mxu0 %v4849_v2 }
  0x43   : > { %4087 = vmatpush3.bf16.msra.mxu0 %v4849_v2 }
  0x44   : > { %4120 = vmatprep.subr.bf16.mxu0 %v4859_v10 }
  0x46   : > { %4057 = vmatmul.mubr.bf16.gmra.mrb[16].mxu0 %v324_v43 }
  0x47   : > { %4060 = vmatprep.mubr.bf16.mxu0 %v325_v44 }
  0x4e   : > { %4061 = vmatmul.mubr.bf16.gmra.mrb[20].mxu0 %v326_v49  ;;  %v4861_v49 = vld [vmem:[%s5854_s2 + $0x8] sm:$0xff]  }
  0x4f   : > { %4064 = vmatprep.mubr.bf16.mxu0 %v327_v50 }
  0x56   : > { %4065 = vmatmul.mubr.bf16.gmra.mrb[24].mxu0 %v328_v55 }
  0x57   : > { %4068 = vmatprep.mubr.bf16.mxu0 %v329_v56 }
  0x5e   : > { %4069 = vmatmul.mubr.bf16.gmra.mrb[28].mxu0 %v330_v59 }
  0xf9   : > { %v4042_v12 = vpop.f32.mrb[0].mxu0 }
  0xfa   : > { %v444_v13 = vadd.f32 %v4042_v12, %v5170_v11  ;;  %v435_v14 = vpop.f32.mrb[1].mxu0 }
  0xfb   : > { %v436_v15 = vadd.f32 %v5170_v11, %v435_v14  ;;  %v4043_v16 = vpop.f32.mrb[2].mxu0 }
  0xfc   : > { %v564_v17 = vmax.f32 %v444_v13, 0.0  ;;  %v447_v18 = vadd.f32 %v4043_v16, %v5170_v11  ;;  %v438_v19 = vpop.f32.mrb[3].mxu0 }
  0xfd   : > { %v562_v20 = vmax.f32 %v436_v15, 0.0  ;;  %v439_v21 = vadd.f32 %v5170_v11, %v438_v19 }
  0xfe   : > { %628 = vst [vmem:[#allocation2 + $0x19] sm:$0xff] %v564_v17  ;;  %v565_v22 = vmax.f32 %v447_v18, 0.0 }
  0xff   : > { %626 = vst [vmem:[#allocation2 + $0x1] sm:$0xff] %v562_v20  ;;  %v563_v23 = vmax.f32 %v439_v21, 0.0 }
 0x100   : > { %629 = vst [vmem:[#allocation2 + $0x21] sm:$0xff] %v565_v22  ;;  %v5176_v24 = vpack.c.bf16 %v565_v22, %v564_v17  ;;  %v4865_v17 = vld [vmem:[%s5854_s2 + $0x18] sm:$0xff]  }
 0x101   : > { %627 = vst [vmem:[#allocation2 + $0x9] sm:$0xff] %v563_v23  ;;  %v4046_v25 = vpop.f32.mrb[4].mxu0  ;;  %v5178_v26 = vpack.c.bf16 %v563_v23, %v562_v20 }
 0x102   : > { %v460_v27 = vadd.f32 %v4046_v25, %v5170_v11  ;;  %v451_v28 = vpop.f32.mrb[5].mxu0 }
 0x103   : > { %v452_v29 = vadd.f32 %v5170_v11, %v451_v28  ;;  %v4047_v30 = vpop.f32.mrb[6].mxu0  ;;  %v4867_v28 = vld [vmem:[%s5854_s2 + $0x20] sm:$0xff]  }
 0x104   : > { %v568_v31 = vmax.f32 %v460_v27, 0.0  ;;  %v463_v32 = vadd.f32 %v4047_v30, %v5170_v11  ;;  %v454_v33 = vpop.f32.mrb[7].mxu0 }
 0x105   : > { %v566_v34 = vmax.f32 %v452_v29, 0.0  ;;  %v455_v35 = vadd.f32 %v5170_v11, %v454_v33  ;;  %v660_v44 = vld [vmem:[#allocation2 + $0x18] sm:$0xff] }
 0x106   : > { %632 = vst [vmem:[#allocation2 + $0x49] sm:$0xff] %v568_v31  ;;  %v569_v36 = vmax.f32 %v463_v32, 0.0  ;;  %v658_v39 = vld [vmem:[#allocation2] sm:$0xff] }
 0x107   : > { %630 = vst [vmem:[#allocation2 + $0x31] sm:$0xff] %v566_v34  ;;  %v567_v37 = vmax.f32 %v455_v35, 0.0  ;;  %v661_v38 = vld [vmem:[#allocation2 + $0x20] sm:$0xff] }
 0x108   : > { %633 = vst [vmem:[#allocation2 + $0x51] sm:$0xff] %v569_v36  ;;  %v659_v40 = vld [vmem:[#allocation2 + $0x8] sm:$0xff]  ;;  %v5184_v41 = vpack.c.bf16 %v569_v36, %v568_v31  ;;  %v5191_v48 = vpack.c.bf16 %v661_v38, %v660_v44 }
 0x109   : > { %631 = vst [vmem:[#allocation2 + $0x39] sm:$0xff] %v567_v37  ;;  %v4050_v42 = vpop.f32.mrb[8].mxu0  ;;  %v5186_v43 = vpack.c.bf16 %v659_v40, %v658_v39  ;;  %v5188_v45 = vpack.c.bf16 %v567_v37, %v566_v34 }
 0x10a   : > { %v476_v46 = vadd.f32 %v4050_v42, %v5170_v11  ;;  %v467_v47 = vpop.f32.mrb[9].mxu0  ;;  %v4869_v42 = vld [vmem:[%s5854_s2 + $0x28] sm:$0xff]  }
 0x10b   : > { %v468_v50 = vadd.f32 %v5170_v11, %v467_v47  ;;  %v4051_v51 = vpop.f32.mrb[10].mxu0  ;;  %4088 = vmatprep.mubr.bf16.mxu0 %v5186_v43 }
 0x10c   : > { %v572_v52 = vmax.f32 %v476_v46, 0.0  ;;  %v479_v53 = vadd.f32 %v4051_v51, %v5170_v11  ;;  %v470_v54 = vpop.f32.mrb[11].mxu0  ;;  %4089 = vmatmul.mubr.bf16.vlgmr.msra.gmra.mrb[32].mxu0 %v5191_v48 }
 0x10d   : > { %v570_v55 = vmax.f32 %v468_v50, 0.0  ;;  %v471_v56 = vadd.f32 %v5170_v11, %v470_v54  ;;  %4121 = vmatpush3.bf16.msra.mxu0 %v4859_v10  ;;  %v664_v10 = vld [vmem:[#allocation2 + $0x48] sm:$0xff]  ;;  %v4871_v54 = vld [vmem:[%s5854_s2 + $0x30] sm:$0xff]  }
 0x10e   : > { %636 = vst [vmem:[#allocation2 + $0x79] sm:$0xff] %v572_v52  ;;  %v573_v57 = vmax.f32 %v479_v53, 0.0  ;;  %4122 = vmatprep.subr.bf16.mxu0 %v4861_v49  ;;  %v662_v61 = vld [vmem:[#allocation2 + $0x30] sm:$0xff] }
 0x10f   : > { %634 = vst [vmem:[#allocation2 + $0x61] sm:$0xff] %v570_v55  ;;  %v571_v59 = vmax.f32 %v471_v56, 0.0  ;;  %v665_v60 = vld [vmem:[#allocation2 + $0x50] sm:$0xff] }
 0x110   : > { %637 = vst [vmem:[#allocation2 + $0x81] sm:$0xff] %v573_v57  ;;  %v663_v62 = vld [vmem:[#allocation2 + $0x38] sm:$0xff]  ;;  %v5204_v0 = vpack.c.bf16 %v573_v57, %v572_v52  ;;  %v5211_v16 = vpack.c.bf16 %v665_v60, %v664_v10  ;;  %v4860_v10 = vld [vmem:[%s5854_s2 + $0x108] sm:$0xff]  }
 0x111   : > { %635 = vst [vmem:[#allocation2 + $0x69] sm:$0xff] %v571_v59  ;;  %v4054_v2 = vpop.f32.mrb[12].mxu0  ;;  %v5206_v12 = vpack.c.bf16 %v663_v62, %v662_v61  ;;  %4123 = vmatpush3.bf16.msra.mxu0 %v4861_v49  ;;  %v5208_v13 = vpack.c.bf16 %v571_v59, %v570_v55 }
 0x112   : > { %v492_v14 = vadd.f32 %v4054_v2, %v5170_v11  ;;  %v483_v15 = vpop.f32.mrb[13].mxu0  ;;  %4124 = vmatprep.subr.bf16.mxu0 %v4863_v58 }
 0x113   : > { %v484_v18 = vadd.f32 %v5170_v11, %v483_v15  ;;  %v4055_v19 = vpop.f32.mrb[14].mxu0  ;;  %4092 = vmatprep.mubr.bf16.mxu0 %v5206_v12 }
 0x114   : > { %v576_v20 = vmax.f32 %v492_v14, 0.0  ;;  %v495_v21 = vadd.f32 %v4055_v19, %v5170_v11  ;;  %v486_v22 = vpop.f32.mrb[15].mxu0  ;;  %4093 = vmatmul.mubr.bf16.gmra.mrb[36].mxu0 %v5211_v16 }
 0x115   : > { %v574_v23 = vmax.f32 %v484_v18, 0.0  ;;  %v487_v25 = vadd.f32 %v5170_v11, %v486_v22  ;;  %4125 = vmatpush3.bf16.msra.mxu0 %v4863_v58  ;;  %v668_v36 = vld [vmem:[#allocation2 + $0x78] sm:$0xff] }
 0x116   : > { %640 = vst [vmem:[#allocation2 + $0xa9] sm:$0xff] %v576_v20  ;;  %v577_v27 = vmax.f32 %v495_v21, 0.0  ;;  %4126 = vmatprep.subr.bf16.mxu0 %v4865_v17  ;;  %v666_v31 = vld [vmem:[#allocation2 + $0x60] sm:$0xff] }
 0x117   : > { %638 = vst [vmem:[#allocation2 + $0x91] sm:$0xff] %v574_v23  ;;  %v575_v29 = vmax.f32 %v487_v25, 0.0  ;;  %v669_v30 = vld [vmem:[#allocation2 + $0x80] sm:$0xff] }
 0x118   : > { %641 = vst [vmem:[#allocation2 + $0xb1] sm:$0xff] %v577_v27  ;;  %v667_v32 = vld [vmem:[#allocation2 + $0x68] sm:$0xff]  ;;  %v5224_v33 = vpack.c.bf16 %v577_v27, %v576_v20  ;;  %v5231_v40 = vpack.c.bf16 %v669_v30, %v668_v36  ;;  %v4873_v20 = vld [vmem:[%s5854_s2 + $0x38] sm:$0xff]  }
 0x119   : > { %639 = vst [vmem:[#allocation2 + $0x99] sm:$0xff] %v575_v29  ;;  %v4058_v34 = vpop.f32.mrb[16].mxu0  ;;  %v5226_v35 = vpack.c.bf16 %v667_v32, %v666_v31  ;;  %4127 = vmatpush3.bf16.msra.mxu0 %v4865_v17  ;;  %v5228_v37 = vpack.c.bf16 %v575_v29, %v574_v23 }
 0x11a   : > { %v508_v38 = vadd.f32 %v4058_v34, %v5170_v11  ;;  %v499_v39 = vpop.f32.mrb[17].mxu0  ;;  %4248 = vmatprep.mubr.bf16.mxu1 %v5224_v33  ;;  %4128 = vmatprep.subr.bf16.mxu0 %v4867_v28 }
 0x11b   : > { %v500_v44 = vadd.f32 %v5170_v11, %v499_v39  ;;  %v4059_v46 = vpop.f32.mrb[18].mxu0  ;;  %4096 = vmatprep.mubr.bf16.mxu0 %v5226_v35 }
 0x11c   : > { %v580_v47 = vmax.f32 %v508_v38, 0.0  ;;  %v511_v49 = vadd.f32 %v4059_v46, %v5170_v11  ;;  %v502_v50 = vpop.f32.mrb[19].mxu0  ;;  %4097 = vmatmul.mubr.bf16.gmra.mrb[40].mxu0 %v5231_v40 }
 0x11d   : > { %v578_v51 = vmax.f32 %v500_v44, 0.0  ;;  %v503_v52 = vadd.f32 %v5170_v11, %v502_v50  ;;  %4129 = vmatpush3.bf16.msra.mxu0 %v4867_v28  ;;  %v672_v62 = vld [vmem:[#allocation2 + $0xa8] sm:$0xff]  ;;  %v4862_v28 = vld [vmem:[%s5854_s2 + $0x110] sm:$0xff]   ;;  %v4864_v44 = vld [vmem:[%s5854_s2 + $0x118] sm:$0xff]  }
 0x11e   : > { %644 = vst [vmem:[#allocation2 + $0xd9] sm:$0xff] %v580_v47  ;;  %v581_v53 = vmax.f32 %v511_v49, 0.0  ;;  %4130 = vmatprep.subr.bf16.mxu0 %v4869_v42  ;;  %v670_v57 = vld [vmem:[#allocation2 + $0x90] sm:$0xff]  ;;  %v5286_v50 = vld [vmem:[%s5854_s2 + $0x180] sm:$0xff]  }
 0x11f   : > { %642 = vst [vmem:[#allocation2 + $0xc1] sm:$0xff] %v578_v51  ;;  %v579_v55 = vmax.f32 %v503_v52, 0.0  ;;  %v673_v56 = vld [vmem:[#allocation2 + $0xb0] sm:$0xff] }
 0x120   : > { %645 = vst [vmem:[#allocation2 + $0xe1] sm:$0xff] %v581_v53  ;;  %v671_v58 = vld [vmem:[#allocation2 + $0x98] sm:$0xff]  ;;  %v5245_v59 = vpack.c.bf16 %v581_v53, %v580_v47  ;;  %v5255_v17 = vpack.c.bf16 %v673_v56, %v672_v62 }
 0x121   : > { %643 = vst [vmem:[#allocation2 + $0xc9] sm:$0xff] %v579_v55  ;;  %v4062_v60 = vpop.f32.mrb[20].mxu0  ;;  %v5247_v61 = vpack.c.bf16 %v671_v58, %v670_v57  ;;  %v5249_v2 = vpack.c.bf16 %v579_v55, %v578_v51  ;;  %4131 = vmatpush3.bf16.msra.mxu0 %v4869_v42  ;;  %v4866_v58 = vld [vmem:[%s5854_s2 + $0x120] sm:$0xff]  }
 0x122   : > { %v524_v14 = vadd.f32 %v4062_v60, %v5170_v11  ;;  %v515_v15 = vpop.f32.mrb[21].mxu0  ;;  %4132 = vmatprep.subr.bf16.mxu0 %v4871_v54 }
 0x123   : > { %v516_v18 = vadd.f32 %v5170_v11, %v515_v15  ;;  %v4063_v19 = vpop.f32.mrb[22].mxu0  ;;  %4100 = vmatprep.mubr.bf16.mxu0 %v5247_v61  ;;  %4249 = vmatmul.mubr.bf16.vlgmr.msra.gmra.mrb[0].mxu1 %v5249_v2 }
 0x124   : > { %v584_v21 = vmax.f32 %v524_v14, 0.0  ;;  %v527_v22 = vadd.f32 %v4063_v19, %v5170_v11  ;;  %v518_v23 = vpop.f32.mrb[23].mxu0  ;;  %4101 = vmatmul.mubr.bf16.gmra.mrb[44].mxu0 %v5255_v17  ;;  %4265 = vmatpush3.bf16.msra.mxu1 %v5161_v9 }
 0x125   : > { %v582_v25 = vmax.f32 %v516_v18, 0.0  ;;  %v519_v27 = vadd.f32 %v5170_v11, %v518_v23  ;;  %4252 = vmatprep.mubr.bf16.mxu1 %v5245_v59  ;;  %4266 = vmatprep.subr.bf16.mxu1 %v4860_v10  ;;  %v676_v39 = vld [vmem:[#allocation2 + $0xd8] sm:$0xff]  ;;  %v4868_v23 = vld [vmem:[%s5854_s2 + $0x128] sm:$0xff]  }
 0x126   : > { %648 = vst [vmem:[#allocation2 + $0x109] sm:$0xff] %v584_v21  ;;  %v585_v29 = vmax.f32 %v527_v22, 0.0  ;;  %4133 = vmatpush3.bf16.msra.mxu0 %v4871_v54  ;;  %v674_v32 = vld [vmem:[#allocation2 + $0xc0] sm:$0xff] }
 0x127   : > { %646 = vst [vmem:[#allocation2 + $0xf1] sm:$0xff] %v582_v25  ;;  %v583_v30 = vmax.f32 %v519_v27, 0.0  ;;  %v677_v31 = vld [vmem:[#allocation2 + $0xe0] sm:$0xff]  ;;  %4134 = vmatprep.subr.bf16.mxu0 %v4873_v20 }
 0x128   : > { %649 = vst [vmem:[#allocation2 + $0x111] sm:$0xff] %v585_v29  ;;  %v675_v9 = vld [vmem:[#allocation2 + $0xc8] sm:$0xff]  ;;  %4267 = vmatpush3.bf16.msra.mxu1 %v4860_v10  ;;  %v5271_v34 = vpack.c.bf16 %v585_v29, %v584_v21  ;;  %v5281_v49 = vpack.c.bf16 %v677_v31, %v676_v39 }
 0x129   : > { %647 = vst [vmem:[#allocation2 + $0xf9] sm:$0xff] %v583_v30  ;;  %v4066_v36 = vpop.f32.mrb[24].mxu0  ;;  %v5273_v38 = vpack.c.bf16 %v675_v9, %v674_v32  ;;  %4268 = vmatprep.subr.bf16.mxu1 %v4862_v28  ;;  %v5275_v42 = vpack.c.bf16 %v583_v30, %v582_v25 }
 0x12a   : > { %v540_v46 = vadd.f32 %v4066_v36, %v5170_v11  ;;  %v531_v47 = vpop.f32.mrb[25].mxu0  ;;  %4135 = vmatpush3.bf16.msra.mxu0 %v4873_v20 }
 0x12b   : > { %v532_v51 = vadd.f32 %v5170_v11, %v531_v47  ;;  %v4067_v52 = vpop.f32.mrb[26].mxu0  ;;  %4104 = vmatprep.mubr.bf16.mxu0 %v5273_v38  ;;  %4253 = vmatmul.mubr.bf16.gmra.mrb[4].mxu1 %v5275_v42 }
 0x12c   : > { %v588_v53 = vmax.f32 %v540_v46, 0.0  ;;  %v543_v54 = vadd.f32 %v4067_v52, %v5170_v11  ;;  %v534_v55 = vpop.f32.mrb[27].mxu0  ;;  %4105 = vmatmul.mubr.bf16.gmra.mrb[48].mxu0 %v5281_v49  ;;  %4269 = vmatpush3.bf16.msra.mxu1 %v4862_v28 }
 0x12d   : > { %v586_v56 = vmax.f32 %v532_v51, 0.0  ;;  %v535_v57 = vadd.f32 %v5170_v11, %v534_v55  ;;  %4256 = vmatprep.mubr.bf16.mxu1 %v5271_v34  ;;  %4270 = vmatprep.subr.bf16.mxu1 %v4864_v44  ;;  %v680_v21 = vld [vmem:[#allocation2 + $0x108] sm:$0xff] }
 0x12e   : > { %652 = vst [vmem:[#allocation2 + $0x139] sm:$0xff] %v588_v53  ;;  %v589_v60 = vmax.f32 %v543_v54, 0.0  ;;  %4168 = vmatprep.subr.bf16.mxu0 %v5286_v50  ;;  %v678_v14 = vld [vmem:[#allocation2 + $0xf0] sm:$0xff] }
 0x12f   : > { %650 = vst [vmem:[#allocation2 + $0x121] sm:$0xff] %v586_v56  ;;  %v587_v62 = vmax.f32 %v535_v57, 0.0  ;;  %v681_v10 = vld [vmem:[#allocation2 + $0x110] sm:$0xff]  ;;  %v4872_v57 = vld [vmem:[%s5854_s2 + $0x138] sm:$0xff]  }
 0x130   : > { %653 = vst [vmem:[#allocation2 + $0x141] sm:$0xff] %v589_v60  ;;  %v679_v15 = vld [vmem:[#allocation2 + $0xf8] sm:$0xff]  ;;  %4271 = vmatpush3.bf16.msra.mxu1 %v4864_v44  ;;  %v5299_v18 = vpack.c.bf16 %v589_v60, %v588_v53  ;;  %v5309_v28 = vpack.c.bf16 %v681_v10, %v680_v21  ;;  %v4870_v44 = vld [vmem:[%s5854_s2 + $0x130] sm:$0xff]   ;;  %v4874_v60 = vld [vmem:[%s5854_s2 + $0x1c0] sm:$0xff]  }
 0x131   : > { %651 = vst [vmem:[#allocation2 + $0x129] sm:$0xff] %v587_v62  ;;  %v4070_v19 = vpop.f32.mrb[28].mxu0  ;;  %v5301_v20 = vpack.c.bf16 %v679_v15, %v678_v14  ;;  %4272 = vmatprep.subr.bf16.mxu1 %v4866_v58  ;;  %v5303_v22 = vpack.c.bf16 %v587_v62, %v586_v56 }
 0x132   : > { %v556_v25 = vadd.f32 %v4070_v19, %v5170_v11  ;;  %v547_v27 = vpop.f32.mrb[29].mxu0 }
 0x133   : > { %v548_v29 = vadd.f32 %v5170_v11, %v547_v27  ;;  %v4071_v30 = vpop.f32.mrb[30].mxu0  ;;  %4108 = vmatprep.mubr.bf16.mxu0 %v5301_v20  ;;  %4257 = vmatmul.mubr.bf16.gmra.mrb[8].mxu1 %v5303_v22  ;;  %v4876_v27 = vld [vmem:[%s5854_s2 + $0x1d0] sm:$0xff]  }
 0x134   : > { %v592_v31 = vmax.f32 %v556_v25, 0.0  ;;  %v559_v32 = vadd.f32 %v4071_v30, %v5170_v11  ;;  %v550_v9 = vpop.f32.mrb[31].mxu0  ;;  %4109 = vmatmul.mubr.bf16.gmra.mrb[52].mxu0 %v5309_v28  ;;  %4273 = vmatpush3.bf16.msra.mxu1 %v4866_v58  ;;  %v4963_v25 = vmov 0.0|0.0   ;;  %v4880_v30 = vld [vmem:[%s5854_s2 + $0x188] sm:$0xff]  }
 0x135   : > { %v590_v36 = vmax.f32 %v548_v29, 0.0  ;;  %v551_v39 = vadd.f32 %v5170_v11, %v550_v9  ;;  %4260 = vmatprep.mubr.bf16.mxu1 %v5299_v18  ;;  %4274 = vmatprep.subr.bf16.mxu1 %v4868_v23  ;;  %v684_v55 = vld [vmem:[#allocation2 + $0x138] sm:$0xff] }
 0x136   : > { %656 = vst [vmem:[#allocation2 + $0x169] sm:$0xff] %v592_v31  ;;  %v593_v46 = vmax.f32 %v559_v32, 0.0  ;;  %v682_v52 = vld [vmem:[#allocation2 + $0x120] sm:$0xff]  ;;  %v4877_v29 = vld [vmem:[%s5854_s2 + $0x1d8] sm:$0xff]   ;;  %v4882_v32 = vld [vmem:[%s5854_s2 + $0x190] sm:$0xff]  }
 0x137   : > { %654 = vst [vmem:[#allocation2 + $0x151] sm:$0xff] %v590_v36  ;;  %v591_v47 = vmax.f32 %v551_v39, 0.0  ;;  %v685_v51 = vld [vmem:[#allocation2 + $0x140] sm:$0xff]  ;;  %v4883_v9 = vld [vmem:[%s5854_s2 + $0x198] sm:$0xff]  }
 0x138   : > { %657 = vst [vmem:[#allocation2 + $0x171] sm:$0xff] %v593_v46  ;;  %v683_v53 = vld [vmem:[#allocation2 + $0x128] sm:$0xff]  ;;  %4275 = vmatpush3.bf16.msra.mxu1 %v4868_v23  ;;  %v5321_v54 = vpack.c.bf16 %v593_v46, %v592_v31  ;;  %v5330_v58 = vpack.c.bf16 %v685_v51, %v684_v55  ;;  %v4878_v31 = vld [vmem:[%s5854_s2 + $0x1e0] sm:$0xff]   ;;  %v4887_v39 = vld [vmem:[%s5854_s2 + $0x1f8] sm:$0xff]  }
 0x139   : > { %655 = vst [vmem:[#allocation2 + $0x159] sm:$0xff] %v591_v47  ;;  %v5323_v11 = vpack.c.bf16 %v683_v53, %v682_v52  ;;  %4276 = vmatprep.subr.bf16.mxu1 %v4870_v44  ;;  %v5325_v56 = vpack.c.bf16 %v591_v47, %v590_v36  ;;  %v4875_v23 = vld [vmem:[%s5854_s2 + $0x1c8] sm:$0xff]   ;;  %v4885_v36 = vld [vmem:[%s5854_s2 + $0x1a0] sm:$0xff]   ;;  %v4888_v47 = vld [vmem:[%s5854_s2 + $0x1b0] sm:$0xff]  }
 0x13a   : > { %v4890_v46 = vld [vmem:[%s5854_s2 + $0x80] sm:$0xff]   ;;  %v4889_v51 = vld [vmem:[%s5854_s2 + $0x1b8] sm:$0xff]   ;;  %v4891_v52 = vld [vmem:[%s5854_s2 + $0x88] sm:$0xff]  }
 0x13b   : > { %4112 = vmatprep.mubr.bf16.mxu0 %v5323_v11  ;;  %4261 = vmatmul.mubr.bf16.gmra.mrb[12].mxu1 %v5325_v56  ;;  %v4892_v53 = vld [vmem:[%s5854_s2 + $0x90] sm:$0xff]   ;;  %v4893_v55 = vld [vmem:[%s5854_s2 + $0x98] sm:$0xff]  }
 0x13c   : > { %4113 = vmatmul.mubr.bf16.gmra.mrb[56].mxu0 %v5330_v58  ;;  %4277 = vmatpush3.bf16.msra.mxu1 %v4870_v44  ;;  %v4886_v44 = vld [vmem:[%s5854_s2 + $0x1a8] sm:$0xff]  }
 0x13d   : > { %4280 = vmatprep.mubr.bf16.mxu1 %v5178_v26  ;;  %4278 = vmatprep.subr.bf16.mxu1 %v4872_v57  ;;  %v688_v19 = vld [vmem:[#allocation2 + $0x168] sm:$0xff] }
 0x13e   : > { %v686_v10 = vld [vmem:[#allocation2 + $0x150] sm:$0xff] }
 0x13f   : > { %v689_v62 = vld [vmem:[#allocation2 + $0x170] sm:$0xff] }
 0x140   : > { %v687_v14 = vld [vmem:[#allocation2 + $0x158] sm:$0xff]  ;;  %4279 = vmatpush3.bf16.msra.mxu1 %v4872_v57  ;;  %v5341_v21 = vpack.c.bf16 %v689_v62, %v688_v19  ;;  %v2252_v57 = vld [vmem:[#allocation2 + $0xaa] sm:$0xff]  ;;  %v2257_v19 = vld [vmem:[#allocation2 + $0xe2] sm:$0xff] }
 0x141   : > { %v5339_v15 = vpack.c.bf16 %v687_v14, %v686_v10  ;;  %4312 = vmatprep.subr.bf16.mxu1 %v4874_v60  ;;  %v2255_v10 = vld [vmem:[#allocation2 + $0xca] sm:$0xff]  ;;  %v4906_v14 = vld [vmem:[%s5854_s2 + $0x200] sm:$0xff]  }
 0x143   : > { %4116 = vmatprep.mubr.bf16.mxu0 %v5339_v15  ;;  %4281 = vmatmul.mubr.bf16.vlgmr.msra.gmra.mrb[16].mxu1 %v5176_v24 }
 0x144   : > { %4117 = vmatmul.mubr.bf16.gmra.mrb[60].mxu0 %v5341_v21  ;;  %4313 = vmatpush3.bf16.msra.mxu1 %v4874_v60 }
 0x145   : > { %4136 = vmatprep.mubr.bf16.mxu0 %v4963_v25  ;;  %4284 = vmatprep.mubr.bf16.mxu1 %v5188_v45 }
 0x146   : > { %4314 = vmatprep.subr.bf16.mxu1 %v4875_v23 }
 0x148   : > { %4315 = vmatpush3.bf16.msra.mxu1 %v4875_v23 }
 0x149   : > { %4316 = vmatprep.subr.bf16.mxu1 %v4876_v27 }
 0x14b   : > { %4285 = vmatmul.mubr.bf16.gmra.mrb[20].mxu1 %v5184_v41 }
 0x14c   : > { %4137 = vmatmul.mubr.bf16.vlgmr.msra.gmra.mrb[32].mxu0 %v5186_v43  ;;  %4288 = vmatprep.mubr.bf16.mxu1 %v5208_v13  ;;  %v4881_v43 = vld [vmem:[%s5854_s2 + $0x1e8] sm:$0xff]  }
 0x14d   : > { %4140 = vmatprep.mubr.bf16.mxu0 %v5191_v48  ;;  %4317 = vmatpush3.bf16.msra.mxu1 %v4876_v27  ;;  %v2260_v27 = vld [vmem:[#allocation2 + $0x10a] sm:$0xff] }
 0x14e   : > { %4318 = vmatprep.subr.bf16.mxu1 %v4877_v29  ;;  %4169 = vmatpush3.bf16.msra.mxu0 %v5286_v50  ;;  %v4884_v50 = vld [vmem:[%s5854_s2 + $0x1f0] sm:$0xff]  }
 0x14f   : > { %4170 = vmatprep.subr.bf16.mxu0 %v4880_v30 }
 0x151   : > { %4319 = vmatpush3.bf16.msra.mxu1 %v4877_v29  ;;  %v2261_v29 = vld [vmem:[#allocation2 + $0x112] sm:$0xff] }
 0x152   : > { %4320 = vmatprep.subr.bf16.mxu1 %v4878_v31  ;;  %4171 = vmatpush3.bf16.msra.mxu0 %v4880_v30 }
 0x153   : > { %4289 = vmatmul.mubr.bf16.gmra.mrb[24].mxu1 %v5204_v0  ;;  %4172 = vmatprep.subr.bf16.mxu0 %v4882_v32 }
 0x154   : > { %4141 = vmatmul.mubr.bf16.gmra.mrb[36].mxu0 %v5206_v12  ;;  %4292 = vmatprep.mubr.bf16.mxu1 %v5228_v37 }
 0x155   : > { %4144 = vmatprep.mubr.bf16.mxu0 %v5211_v16  ;;  %4321 = vmatpush3.bf16.msra.mxu1 %v4878_v31  ;;  %v5559_v31 = vpack.c.bf16 %v2261_v29, %v2260_v27 }
 0x156   : > { %4322 = vmatprep.subr.bf16.mxu1 %v4881_v43  ;;  %4173 = vmatpush3.bf16.msra.mxu0 %v4882_v32  ;;  %v2262_v32 = vld [vmem:[#allocation2 + $0x122] sm:$0xff] }
 0x157   : > { %4174 = vmatprep.subr.bf16.mxu0 %v4883_v9 }
 0x159   : > { %4323 = vmatpush3.bf16.msra.mxu1 %v4881_v43  ;;  %v2263_v43 = vld [vmem:[#allocation2 + $0x12a] sm:$0xff] }
 0x15a   : > { %4175 = vmatpush3.bf16.msra.mxu0 %v4883_v9  ;;  %4324 = vmatprep.subr.bf16.mxu1 %v4884_v50  ;;  %v2264_v9 = vld [vmem:[#allocation2 + $0x13a] sm:$0xff] }
 0x15b   : > { %4293 = vmatmul.mubr.bf16.gmra.mrb[28].mxu1 %v5224_v33  ;;  %4176 = vmatprep.subr.bf16.mxu0 %v4885_v36 }
 0x15c   : > { %4145 = vmatmul.mubr.bf16.gmra.mrb[40].mxu0 %v5226_v35  ;;  %4296 = vmatprep.mubr.bf16.mxu1 %v5249_v2 }
 0x15d   : > { %4148 = vmatprep.mubr.bf16.mxu0 %v5231_v40  ;;  %4325 = vmatpush3.bf16.msra.mxu1 %v4884_v50  ;;  %v2265_v50 = vld [vmem:[#allocation2 + $0x142] sm:$0xff] }
 0x15e   : > { %4177 = vmatpush3.bf16.msra.mxu0 %v4885_v36  ;;  %4326 = vmatprep.subr.bf16.mxu1 %v4887_v39  ;;  %v5563_v36 = vpack.c.bf16 %v2263_v43, %v2262_v32 }
 0x15f   : > { %4178 = vmatprep.subr.bf16.mxu0 %v4886_v44 }
 0x161   : > { %4327 = vmatpush3.bf16.msra.mxu1 %v4887_v39  ;;  %v2266_v39 = vld [vmem:[#allocation2 + $0x152] sm:$0xff] }
 0x162   : > { %4179 = vmatpush3.bf16.msra.mxu0 %v4886_v44  ;;  %4360 = vmatprep.subr.bf16.mxu1 %v4890_v46  ;;  %v2267_v44 = vld [vmem:[#allocation2 + $0x15a] sm:$0xff] }
 0x163   : > { %4297 = vmatmul.mubr.bf16.gmra.mrb[0].mxu1 %v5245_v59  ;;  %4180 = vmatprep.subr.bf16.mxu0 %v4888_v47 }
 0x164   : > { %4149 = vmatmul.mubr.bf16.gmra.mrb[44].mxu0 %v5247_v61  ;;  %4300 = vmatprep.mubr.bf16.mxu1 %v5275_v42 }
 0x165   : > { %4152 = vmatprep.mubr.bf16.mxu0 %v5255_v17 }
 0x166   : > { %4181 = vmatpush3.bf16.msra.mxu0 %v4888_v47  ;;  %v4907_v47 = vld [vmem:[%s5854_s2 + $0x208] sm:$0xff]  }
 0x167   : > { %4182 = vmatprep.subr.bf16.mxu0 %v4889_v51 }
 0x16a   : > { %4183 = vmatpush3.bf16.msra.mxu0 %v4889_v51  ;;  %v4908_v51 = vld [vmem:[%s5854_s2 + $0x210] sm:$0xff]  }
 0x16b   : > { %4301 = vmatmul.mubr.bf16.gmra.mrb[4].mxu1 %v5271_v34  ;;  %4216 = vmatprep.subr.bf16.mxu0 %v5099_v63 }
 0x16c   : > { %4153 = vmatmul.mubr.bf16.gmra.mrb[48].mxu0 %v5273_v38  ;;  %4304 = vmatprep.mubr.bf16.mxu1 %v5303_v22 }
 0x16d   : > { %4156 = vmatprep.mubr.bf16.mxu0 %v5281_v49 }
 0x173   : > { %4305 = vmatmul.mubr.bf16.gmra.mrb[8].mxu1 %v5299_v18 }
 0x174   : > { %4157 = vmatmul.mubr.bf16.gmra.mrb[52].mxu0 %v5301_v20  ;;  %4308 = vmatprep.mubr.bf16.mxu1 %v5325_v56 }
 0x175   : > { %4160 = vmatprep.mubr.bf16.mxu0 %v5309_v28 }
 0x17b   : > { %4309 = vmatmul.mubr.bf16.gmra.mrb[12].mxu1 %v5321_v54 }
 0x17c   : > { %4161 = vmatmul.mubr.bf16.gmra.mrb[56].mxu0 %v5323_v11  ;;  %4328 = vmatprep.mubr.bf16.mxu1 %v5176_v24 }
 0x17d   : > { %4164 = vmatprep.mubr.bf16.mxu0 %v5330_v58 }
 0x183   : > { %4329 = vmatmul.mubr.bf16.vlgmr.msra.gmra.mrb[16].mxu1 %v5188_v45 }
 0x184   : > { %4165 = vmatmul.mubr.bf16.gmra.mrb[60].mxu0 %v5339_v15  ;;  %4361 = vmatpush3.bf16.msra.mxu1 %v4890_v46  ;;  %v5569_v46 = vpack.c.bf16 %v2267_v44, %v2266_v39 }
 0x185   : > { %4184 = vmatprep.mubr.bf16.mxu0 %v5191_v48  ;;  %4332 = vmatprep.mubr.bf16.mxu1 %v5184_v41  ;;  %v4894_v48 = vld [vmem:[%s5854_s2 + $0xa0] sm:$0xff]  }
 0x186   : > { %4362 = vmatprep.subr.bf16.mxu1 %v4891_v52 }
 0x188   : > { %4363 = vmatpush3.bf16.msra.mxu1 %v4891_v52  ;;  %v4909_v52 = vld [vmem:[%s5854_s2 + $0x218] sm:$0xff]  }
 0x189   : > { %4364 = vmatprep.subr.bf16.mxu1 %v4892_v53 }
 0x18b   : > { %4333 = vmatmul.mubr.bf16.gmra.mrb[20].mxu1 %v5208_v13 }
 0x18c   : > { %4185 = vmatmul.mubr.bf16.vlgmr.msra.gmra.mrb[32].mxu0 %v5206_v12  ;;  %4336 = vmatprep.mubr.bf16.mxu1 %v5204_v0  ;;  %v4895_v12 = vld [vmem:[%s5854_s2 + $0xa8] sm:$0xff]  }
 0x18d   : > { %4188 = vmatprep.mubr.bf16.mxu0 %v5211_v16  ;;  %4365 = vmatpush3.bf16.msra.mxu1 %v4892_v53  ;;  %v4899_v16 = vld [vmem:[%s5854_s2 + $0x148] sm:$0xff]   ;;  %v4910_v53 = vld [vmem:[%s5854_s2 + $0x220] sm:$0xff]  }
 0x18e   : > { %4366 = vmatprep.subr.bf16.mxu1 %v4893_v55  ;;  %4217 = vmatpush3.bf16.msra.mxu0 %v5099_v63  ;;  %v4896_v63 = vld [vmem:[%s5854_s2 + $0xb0] sm:$0xff]  }
 0x18f   : > { %4218 = vmatprep.subr.bf16.mxu0 %v5109_v1 }
 0x191   : > { %4367 = vmatpush3.bf16.msra.mxu1 %v4893_v55  ;;  %v4911_v55 = vld [vmem:[%s5854_s2 + $0x228] sm:$0xff]  }
 0x192   : > { %4368 = vmatprep.subr.bf16.mxu1 %v4894_v48  ;;  %4219 = vmatpush3.bf16.msra.mxu0 %v5109_v1  ;;  %v4897_v1 = vld [vmem:[%s5854_s2 + $0xb8] sm:$0xff]  }
 0x193   : > { %4337 = vmatmul.mubr.bf16.gmra.mrb[24].mxu1 %v5228_v37  ;;  %4220 = vmatprep.subr.bf16.mxu0 %v5119_v3 }
 0x194   : > { %4189 = vmatmul.mubr.bf16.gmra.mrb[36].mxu0 %v5226_v35  ;;  %4340 = vmatprep.mubr.bf16.mxu1 %v5224_v33  ;;  %v4900_v35 = vld [vmem:[%s5854_s2 + $0x150] sm:$0xff]  }
 0x195   : > { %4192 = vmatprep.mubr.bf16.mxu0 %v5231_v40  ;;  %4369 = vmatpush3.bf16.msra.mxu1 %v4894_v48  ;;  %v2242_v40 = vld [vmem:[#allocation2 + $0x32] sm:$0xff] }
 0x196   : > { %4370 = vmatprep.subr.bf16.mxu1 %v4895_v12  ;;  %4221 = vmatpush3.bf16.msra.mxu0 %v5119_v3  ;;  %v4898_v3 = vld [vmem:[%s5854_s2 + $0x140] sm:$0xff]   ;;  %v4912_v48 = vld [vmem:[%s5854_s2 + $0x230] sm:$0xff]  }
 0x197   : > { %4222 = vmatprep.subr.bf16.mxu0 %v5126_v4 }
 0x199   : > { %4371 = vmatpush3.bf16.msra.mxu1 %v4895_v12  ;;  %v4913_v12 = vld [vmem:[%s5854_s2 + $0x238] sm:$0xff]  }
 0x19a   : > { %4223 = vmatpush3.bf16.msra.mxu0 %v5126_v4  ;;  %4372 = vmatprep.subr.bf16.mxu1 %v4896_v63  ;;  %v2238_v4 = vld [vmem:[#allocation2 + $0x2] sm:$0xff] }
 0x19b   : > { %4341 = vmatmul.mubr.bf16.gmra.mrb[28].mxu1 %v5249_v2  ;;  %4224 = vmatprep.subr.bf16.mxu0 %v5133_v5  ;;  %v2245_v2 = vld [vmem:[#allocation2 + $0x52] sm:$0xff] }
 0x19c   : > { %4193 = vmatmul.mubr.bf16.gmra.mrb[40].mxu0 %v5247_v61  ;;  %4344 = vmatprep.mubr.bf16.mxu1 %v5245_v59  ;;  %v2243_v59 = vld [vmem:[#allocation2 + $0x3a] sm:$0xff]  ;;  %v2244_v61 = vld [vmem:[#allocation2 + $0x4a] sm:$0xff] }
 0x19d   : > { %4196 = vmatprep.mubr.bf16.mxu0 %v5255_v17  ;;  %4373 = vmatpush3.bf16.msra.mxu1 %v4896_v63  ;;  %v5508_v17 = vpack.c.bf16 %v2243_v59, %v2242_v40  ;;  %v2268_v63 = vld [vmem:[#allocation2 + $0x16a] sm:$0xff] }
 0x19e   : > { %4225 = vmatpush3.bf16.msra.mxu0 %v5133_v5  ;;  %4374 = vmatprep.subr.bf16.mxu1 %v4897_v1  ;;  %v2239_v5 = vld [vmem:[#allocation2 + $0xa] sm:$0xff] }
 0x19f   : > { %4226 = vmatprep.subr.bf16.mxu0 %v5140_v6 }
 0x1a1   : > { %4375 = vmatpush3.bf16.msra.mxu1 %v4897_v1  ;;  %v2269_v1 = vld [vmem:[#allocation2 + $0x172] sm:$0xff] }
 0x1a2   : > { %4227 = vmatpush3.bf16.msra.mxu0 %v5140_v6  ;;  %4408 = vmatprep.subr.bf16.mxu1 %v4898_v3  ;;  %v2240_v6 = vld [vmem:[#allocation2 + $0x1a] sm:$0xff] }
 0x1a3   : > { %4345 = vmatmul.mubr.bf16.gmra.mrb[0].mxu1 %v5275_v42  ;;  %4228 = vmatprep.subr.bf16.mxu0 %v5147_v7  ;;  %v2246_v42 = vld [vmem:[#allocation2 + $0x62] sm:$0xff] }
 0x1a4   : > { %4197 = vmatmul.mubr.bf16.gmra.mrb[44].mxu0 %v5273_v38  ;;  %4348 = vmatprep.mubr.bf16.mxu1 %v5271_v34  ;;  %v5510_v34 = vpack.c.bf16 %v2245_v2, %v2244_v61  ;;  %v4901_v38 = vld [vmem:[%s5854_s2 + $0x158] sm:$0xff]  }
 0x1a5   : > { %4200 = vmatprep.mubr.bf16.mxu0 %v5281_v49  ;;  %v2247_v49 = vld [vmem:[#allocation2 + $0x6a] sm:$0xff] }
 0x1a6   : > { %4229 = vmatpush3.bf16.msra.mxu0 %v5147_v7  ;;  %v2241_v7 = vld [vmem:[#allocation2 + $0x22] sm:$0xff] }
 0x1a7   : > { %4230 = vmatprep.subr.bf16.mxu0 %v5154_v8  ;;  %v5500_v33 = vpack.c.bf16 %v2241_v7, %v2240_v6  ;;  %v4916_v6 = vld [vmem:[%s5855_s3 + $0x10] sm:$0xff]   ;;  %v4917_v7 = vld [vmem:[%s5855_s3 + $0x18] sm:$0xff]  }
 0x1aa   : > { %4231 = vmatpush3.bf16.msra.mxu0 %v5154_v8  ;;  %v5494_v8 = vpack.c.bf16 %v2239_v5, %v2238_v4  ;;  %v4914_v4 = vld [vmem:[%s5855_s3] sm:$0xff]   ;;  %v4915_v5 = vld [vmem:[%s5855_s3 + $0x8] sm:$0xff]  }
 0x1ab   : > { %4349 = vmatmul.mubr.bf16.gmra.mrb[4].mxu1 %v5303_v22  ;;  %v2249_v22 = vld [vmem:[#allocation2 + $0x82] sm:$0xff]  ;;  %4504 = vmatprep.subr.bf16.mxu0 %v4914_v4 }
 0x1ac   : > { %4201 = vmatmul.mubr.bf16.gmra.mrb[48].mxu0 %v5301_v20  ;;  %4352 = vmatprep.mubr.bf16.mxu1 %v5299_v18  ;;  %v4902_v18 = vld [vmem:[%s5854_s2 + $0x160] sm:$0xff]  }
 0x1ad   : > { %4204 = vmatprep.mubr.bf16.mxu0 %v5309_v28  ;;  %v2248_v20 = vld [vmem:[#allocation2 + $0x7a] sm:$0xff]  ;;  %v5522_v28 = vpack.c.bf16 %v2247_v49, %v2246_v42  ;;  %v4919_v49 = vld [vmem:[%s5855_s3 + $0x28] sm:$0xff]  }
 0x1b3   : > { %4353 = vmatmul.mubr.bf16.gmra.mrb[8].mxu1 %v5325_v56  ;;  %v4904_v56 = vld [vmem:[%s5854_s2 + $0x170] sm:$0xff]  }
 0x1b4   : > { %4205 = vmatmul.mubr.bf16.gmra.mrb[52].mxu0 %v5323_v11  ;;  %4356 = vmatprep.mubr.bf16.mxu1 %v5321_v54  ;;  %v5524_v54 = vpack.c.bf16 %v2249_v22, %v2248_v20  ;;  %v2251_v11 = vld [vmem:[#allocation2 + $0x9a] sm:$0xff] }
 0x1b5   : > { %4208 = vmatprep.mubr.bf16.mxu0 %v5330_v58  ;;  %v2253_v58 = vld [vmem:[#allocation2 + $0xb2] sm:$0xff] }
 0x1b6   : > { %v5538_v62 = vpack.c.bf16 %v2253_v58, %v2252_v57 }
 0x1bb   : > { %4357 = vmatmul.mubr.bf16.gmra.mrb[12].mxu1 %v4963_v25 }
 0x1bc   : > { %4209 = vmatmul.mubr.bf16.gmra.mrb[56].mxu0 %v5339_v15  ;;  %4376 = vmatprep.mubr.bf16.mxu1 %v4963_v25  ;;  %v2256_v15 = vld [vmem:[#allocation2 + $0xda] sm:$0xff] }
 0x1bd   : > { %4212 = vmatprep.mubr.bf16.mxu0 %v5341_v21  ;;  %v5552_v23 = vpack.c.bf16 %v2257_v19, %v2256_v15 }
 0x1c3   : > { %4377 = vmatmul.mubr.bf16.vlgmr.msra.gmra.mrb[16].mxu1 %v5494_v8 }
 0x1c4   : > { %4213 = vmatmul.mubr.bf16.gmra.mrb[60].mxu0 %v4963_v25  ;;  %4409 = vmatpush3.bf16.msra.mxu1 %v4898_v3  ;;  %v2543_v3 = vpack.c.bf16 %v2269_v1, %v2268_v63 }
 0x1c5   : > { %4232 = vmatprep.mubr.bf16.mxu0 %v4963_v25  ;;  %4380 = vmatprep.mubr.bf16.mxu1 %v5500_v33 }
 0x1c6   : > { %4410 = vmatprep.subr.bf16.mxu1 %v4899_v16 }
 0x1c8   : > { %4411 = vmatpush3.bf16.msra.mxu1 %v4899_v16 }
 0x1c9   : > { %4412 = vmatprep.subr.bf16.mxu1 %v4900_v35 }
 0x1cb   : > { %4381 = vmatmul.mubr.bf16.gmra.mrb[20].mxu1 %v5508_v17 }
 0x1cc   : > { %4233 = vmatmul.mubr.bf16.vlgmr.msra.gmra.mrb[32].mxu0 %v5178_v26  ;;  %4384 = vmatprep.mubr.bf16.mxu1 %v5510_v34  ;;  %v2250_v26 = vld [vmem:[#allocation2 + $0x92] sm:$0xff] }
 0x1cd   : > { %4236 = vmatprep.mubr.bf16.mxu0 %v5176_v24  ;;  %4413 = vmatpush3.bf16.msra.mxu1 %v4900_v35  ;;  %v4903_v24 = vld [vmem:[%s5854_s2 + $0x168] sm:$0xff]   ;;  %v5536_v60 = vpack.c.bf16 %v2251_v11, %v2250_v26 }
 0x1ce   : > { %4414 = vmatprep.subr.bf16.mxu1 %v4901_v38  ;;  %4505 = vmatpush3.bf16.msra.mxu0 %v4914_v4 }
 0x1cf   : > { %4506 = vmatprep.subr.bf16.mxu0 %v4915_v5 }
 0x1d1   : > { %4415 = vmatpush3.bf16.msra.mxu1 %v4901_v38 }
 0x1d2   : > { %4416 = vmatprep.subr.bf16.mxu1 %v4902_v18  ;;  %4507 = vmatpush3.bf16.msra.mxu0 %v4915_v5 }
 0x1d3   : > { %4385 = vmatmul.mubr.bf16.gmra.mrb[24].mxu1 %v5522_v28  ;;  %4508 = vmatprep.subr.bf16.mxu0 %v4916_v6 }
 0x1d4   : > { %4237 = vmatmul.mubr.bf16.gmra.mrb[36].mxu0 %v5188_v45  ;;  %4388 = vmatprep.mubr.bf16.mxu1 %v5524_v54  ;;  %v2254_v45 = vld [vmem:[#allocation2 + $0xc2] sm:$0xff] }
 0x1d5   : > { %4240 = vmatprep.mubr.bf16.mxu0 %v5184_v41  ;;  %4417 = vmatpush3.bf16.msra.mxu1 %v4902_v18  ;;  %v4905_v41 = vld [vmem:[%s5854_s2 + $0x178] sm:$0xff]   ;;  %v5550_v21 = vpack.c.bf16 %v2255_v10, %v2254_v45 }
 0x1d6   : > { %4418 = vmatprep.subr.bf16.mxu1 %v4903_v24  ;;  %4509 = vmatpush3.bf16.msra.mxu0 %v4916_v6 }
 0x1d7   : > { %4510 = vmatprep.subr.bf16.mxu0 %v4917_v7 }
 0x1d9   : > { %4419 = vmatpush3.bf16.msra.mxu1 %v4903_v24  ;;  %v4921_v24 = vld [vmem:[%s5855_s3 + $0x38] sm:$0xff]  }
 0x1da   : > { %4420 = vmatprep.subr.bf16.mxu1 %v4904_v56  ;;  %4511 = vmatpush3.bf16.msra.mxu0 %v4917_v7 }
 0x1db   : > { %4389 = vmatmul.mubr.bf16.gmra.mrb[28].mxu1 %v5536_v60 }
 0x1dc   : > { %4241 = vmatmul.mubr.bf16.gmra.mrb[40].mxu0 %v5208_v13  ;;  %4392 = vmatprep.mubr.bf16.mxu1 %v5538_v62  ;;  %v2259_v13 = vld [vmem:[#allocation2 + $0xfa] sm:$0xff] }
 0x1dd   : > { %4244 = vmatprep.mubr.bf16.mxu0 %v5204_v0  ;;  %4421 = vmatpush3.bf16.msra.mxu1 %v4904_v56  ;;  %v2258_v0 = vld [vmem:[#allocation2 + $0xf2] sm:$0xff] }
 0x1de   : > { %4422 = vmatprep.subr.bf16.mxu1 %v4905_v41  ;;  %v5557_v30 = vpack.c.bf16 %v2259_v13, %v2258_v0  ;;  %v5688_v13 = vld [vmem:[%s5857_s5] ss:$0 sm:$0xff] }
 0x1e1   : > { %4423 = vmatpush3.bf16.msra.mxu1 %v4905_v41 }
 0x1e2   : > { %4456 = vmatprep.subr.bf16.mxu1 %v4906_v14 }
 0x1e3   : > { %4393 = vmatmul.mubr.bf16.gmra.mrb[0].mxu1 %v5550_v21 }
 0x1e4   : > { %4245 = vmatmul.mubr.bf16.gmra.mrb[44].mxu0 %v5228_v37  ;;  %4396 = vmatprep.mubr.bf16.mxu1 %v5552_v23  ;;  %v5565_v37 = vpack.c.bf16 %v2265_v50, %v2264_v9 }
 0x1eb   : > { %4397 = vmatmul.mubr.bf16.gmra.mrb[4].mxu1 %v5557_v30 }
 0x1ec   : > { %4400 = vmatprep.mubr.bf16.mxu1 %v5559_v31 }
 0x1f3   : > { %4401 = vmatmul.mubr.bf16.gmra.mrb[8].mxu1 %v5563_v36 }
 0x1f4   : > { %4404 = vmatprep.mubr.bf16.mxu1 %v5565_v37 }
 0x1fb   : > { %4405 = vmatmul.mubr.bf16.gmra.mrb[12].mxu1 %v5569_v46 }
 0x1fc   : > { %4424 = vmatprep.mubr.bf16.mxu1 %v5494_v8  ;;  %v4918_v8 = vld [vmem:[%s5855_s3 + $0x20] sm:$0xff]  }
 0x1fd   : > { %4512 = vmatprep.subr.bf16.mxu0 %v4918_v8 }
 0x1fe   : > { %4513 = vmatpush3.bf16.msra.mxu0 %v4918_v8 }
 0x1ff   : > { %4514 = vmatprep.subr.bf16.mxu0 %v4919_v49 }
 0x202   : > { %4515 = vmatpush3.bf16.msra.mxu0 %v4919_v49 }
 0x203   : > { %4425 = vmatmul.mubr.bf16.vlgmr.msra.gmra.mrb[16].mxu1 %v5500_v33 }
 0x204   : > { %4457 = vmatpush3.bf16.msra.mxu1 %v4906_v14  ;;  %4428 = vmatprep.mubr.bf16.mxu1 %v5508_v17 }
 0x205   : > { %4458 = vmatprep.subr.bf16.mxu1 %v4907_v47 }
 0x208   : > { %4459 = vmatpush3.bf16.msra.mxu1 %v4907_v47 }
 0x209   : > { %4460 = vmatprep.subr.bf16.mxu1 %v4908_v51 }
 0x20b   : > { %4429 = vmatmul.mubr.bf16.gmra.mrb[20].mxu1 %v5510_v34 }
 0x20c   : > { %4432 = vmatprep.mubr.bf16.mxu1 %v5522_v28  ;;  %4461 = vmatpush3.bf16.msra.mxu1 %v4908_v51 }
 0x20d   : > { %4462 = vmatprep.subr.bf16.mxu1 %v4909_v52 }
 0x210   : > { %4463 = vmatpush3.bf16.msra.mxu1 %v4909_v52 }
 0x211   : > { %4464 = vmatprep.subr.bf16.mxu1 %v4910_v53 }
 0x213   : > { %4433 = vmatmul.mubr.bf16.gmra.mrb[24].mxu1 %v5524_v54 }
 0x214   : > { %4436 = vmatprep.mubr.bf16.mxu1 %v5536_v60  ;;  %4465 = vmatpush3.bf16.msra.mxu1 %v4910_v53 }
 0x215   : > { %4466 = vmatprep.subr.bf16.mxu1 %v4911_v55 }
 0x218   : > { %4467 = vmatpush3.bf16.msra.mxu1 %v4911_v55 }
 0x219   : > { %4468 = vmatprep.subr.bf16.mxu1 %v4912_v48 }
 0x21b   : > { %4437 = vmatmul.mubr.bf16.gmra.mrb[28].mxu1 %v5538_v62 }
 0x21c   : > { %4440 = vmatprep.mubr.bf16.mxu1 %v5550_v21  ;;  %4469 = vmatpush3.bf16.msra.mxu1 %v4912_v48 }
 0x21d   : > { %4470 = vmatprep.subr.bf16.mxu1 %v4913_v12 }
 0x220   : > { %4471 = vmatpush3.bf16.msra.mxu1 %v4913_v12 }
 0x223   : > { %4441 = vmatmul.mubr.bf16.gmra.mrb[0].mxu1 %v5552_v23 }
 0x224   : > { %4444 = vmatprep.mubr.bf16.mxu1 %v5557_v30 }
 0x22b   : > { %4445 = vmatmul.mubr.bf16.gmra.mrb[4].mxu1 %v5559_v31 }
 0x22c   : > { %4448 = vmatprep.mubr.bf16.mxu1 %v5563_v36 }
 0x233   : > { %4449 = vmatmul.mubr.bf16.gmra.mrb[8].mxu1 %v5565_v37 }
 0x234   : > { %4452 = vmatprep.mubr.bf16.mxu1 %v5569_v46 }
 0x23b   : > { %4453 = vmatmul.mubr.bf16.gmra.mrb[12].mxu1 %v2543_v3 }
 0x23c   : > { %4472 = vmatprep.mubr.bf16.mxu1 %v5500_v33 }
 0x243   : > { %4473 = vmatmul.mubr.bf16.vlgmr.msra.gmra.mrb[16].mxu1 %v5508_v17 }
 0x244   : > { %4476 = vmatprep.mubr.bf16.mxu1 %v5510_v34 }
 0x24b   : > { %4477 = vmatmul.mubr.bf16.gmra.mrb[20].mxu1 %v5522_v28 }
 0x24c   : > { %4480 = vmatprep.mubr.bf16.mxu1 %v5524_v54  ;;  %v4920_v54 = vld [vmem:[%s5855_s3 + $0x30] sm:$0xff]  }
 0x24d   : > { %4516 = vmatprep.subr.bf16.mxu0 %v4920_v54 }
 0x24e   : > { %4517 = vmatpush3.bf16.msra.mxu0 %v4920_v54 }
 0x24f   : > { %4518 = vmatprep.subr.bf16.mxu0 %v4921_v24 }
 0x252   : > { %4519 = vmatpush3.bf16.msra.mxu0 %v4921_v24 }
 0x253   : > { %4481 = vmatmul.mubr.bf16.gmra.mrb[24].mxu1 %v5536_v60 }
 0x254   : > { %4484 = vmatprep.mubr.bf16.mxu1 %v5538_v62 }
 0x25b   : > { %4485 = vmatmul.mubr.bf16.gmra.mrb[28].mxu1 %v5550_v21 }
 0x25c   : > { %4488 = vmatprep.mubr.bf16.mxu1 %v5552_v23 }
 0x263   : > { %4489 = vmatmul.mubr.bf16.gmra.mrb[0].mxu1 %v5557_v30 }
 0x264   : > { %4492 = vmatprep.mubr.bf16.mxu1 %v5559_v31 }
 0x26b   : > { %4493 = vmatmul.mubr.bf16.gmra.mrb[4].mxu1 %v5563_v36 }
 0x26c   : > { %4496 = vmatprep.mubr.bf16.mxu1 %v5565_v37 }
 0x273   : > { %4497 = vmatmul.mubr.bf16.gmra.mrb[8].mxu1 %v5569_v46 }
 0x274   : > { %4500 = vmatprep.mubr.bf16.mxu1 %v2543_v3 }
 0x27b   : > { %4501 = vmatmul.mubr.bf16.gmra.mrb[12].mxu1 %v4963_v25 }
 0x27f   : > { %v5638_v16 = vpop.f32.mrb[48].mxu0 }
 0x280   : > { %v5640_v33 = vpop.f32.mrb[49].mxu0 }
 0x281   : > { %v5642_v35 = vpop.f32.mrb[50].mxu0 }
 0x282   : > { %v5644_v40 = vpop.f32.mrb[51].mxu0 }
 0x287   : > { %v5646_v59 = vpop.f32.mrb[52].mxu0 }
 0x288   : > { %v5648_v61 = vpop.f32.mrb[53].mxu0 }
 0x289   : > { %v5650_v2 = vpop.f32.mrb[54].mxu0 }
 0x28a   : > { %v5652_v17 = vpop.f32.mrb[55].mxu0 }
 0x28f   : > { %v5654_v34 = vpop.f32.mrb[56].mxu0 }
 0x290   : > { %v5656_v38 = vpop.f32.mrb[57].mxu0 }
 0x291   : > { %v5658_v25 = vpop.f32.mrb[58].mxu0 }
 0x292   : > { %v5660_v42 = vpop.f32.mrb[59].mxu0 }
 0x297   : > { %v5665_v18 = vpop.f32.mrb[60].mxu0 }
 0x298   : > { %v5667_v20 = vpop.f32.mrb[61].mxu0 }
 0x299   : > { %v5669_v22 = vpop.f32.mrb[62].mxu0 }
 0x29a   : > { %v5671_v28 = vpop.f32.mrb[63].mxu0 }
 0x29f   : > { %v4234_v26 = vpop.f32.mrb[32].mxu0 }
 0x2a0   : > { %v1562_v11 = vpop.f32.mrb[33].mxu0 }
 0x2a1   : > { %v4235_v56 = vpop.f32.mrb[34].mxu0 }
 0x2a2   : > { %v1565_v57 = vpop.f32.mrb[35].mxu0 }
 0x2a7   : > { %v4238_v58 = vpop.f32.mrb[36].mxu0 }
 0x2a8   : > { %v1578_v60 = vpop.f32.mrb[37].mxu0 }
 0x2a9   : > { %v4239_v62 = vpop.f32.mrb[38].mxu0 }
 0x2aa   : > { %v1581_v41 = vpop.f32.mrb[39].mxu0 }
 0x2af   : > { %v4242_v45 = vpop.f32.mrb[40].mxu0 }
 0x2b0   : > { %v1594_v10 = vpop.f32.mrb[41].mxu0 }
 0x2b1   : > { %v4243_v14 = vpop.f32.mrb[42].mxu0 }
 0x2b2   : > { %v1597_v15 = vpop.f32.mrb[43].mxu0 }
 0x2b7   : > { %v4246_v19 = vpop.f32.mrb[44].mxu0 }
 0x2b8   : > { %v5679_v21 = vpop.f32.mrb[45].mxu0 }
 0x2b9   : > { %v5681_v23 = vpop.f32.mrb[46].mxu0 }
 0x2ba   : > { %v5683_v0 = vpop.f32.mrb[47].mxu0 }
 0x316   : > { %v4474_v27 = vpop.f32.mrb[16].mxu1 }
 0x317   : > { %v4568_v29 = vadd.f32 %v4474_v27, %v4234_v26  ;;  %v2901_v30 = vpop.f32.mrb[17].mxu1 }
 0x318   : > { %v4569_v31 = vadd.f32 %v2901_v30, %v1562_v11  ;;  %v4475_v32 = vpop.f32.mrb[18].mxu1 }
 0x319   : > { %v3068_v43 = vadd.f32 %v4568_v29, %v5688_v13  ;;  %v4570_v9 = vadd.f32 %v4475_v32, %v4235_v56  ;;  %v2904_v50 = vpop.f32.mrb[19].mxu1 }
 0x31a   : > { %v3066_v36 = vadd.f32 %v4569_v31, %v5688_v13  ;;  %v4571_v37 = vadd.f32 %v2904_v50, %v1565_v57 }
 0x31b   : > { %v3069_v39 = vadd.f32 %v4570_v9, %v5688_v13  ;;  %v3100_v46 = vmax.f32 %v3068_v43, 0.0 }
 0x31c   : > { %v3067_v44 = vadd.f32 %v4571_v37, %v5688_v13  ;;  %v3098_v51 = vmax.f32 %v3066_v36, 0.0 }
 0x31d   : > { %v3101_v47 = vmax.f32 %v3069_v39, 0.0 }
 0x31e   : > { %v3099_v52 = vmax.f32 %v3067_v44, 0.0  ;;  %v4478_v53 = vpop.f32.mrb[20].mxu1 }
 0x31f   : > { %v3131_v55 = vpack.c.bf16 %v3101_v47, %v3100_v46  ;;  %v4572_v48 = vadd.f32 %v4478_v53, %v4238_v58  ;;  %v2917_v12 = vpop.f32.mrb[21].mxu1 }
 0x320   : > { %v4573_v63 = vadd.f32 %v2917_v12, %v1578_v60  ;;  %v4479_v1 = vpop.f32.mrb[22].mxu1  ;;  %v3130_v3 = vpack.c.bf16 %v3099_v52, %v3098_v51 }
 0x321   : > { %v3072_v4 = vadd.f32 %v4572_v48, %v5688_v13  ;;  %v4574_v5 = vadd.f32 %v4479_v1, %v4239_v62  ;;  %v2920_v6 = vpop.f32.mrb[23].mxu1 }
 0x322   : > { %v3070_v7 = vadd.f32 %v4573_v63, %v5688_v13  ;;  %v4575_v8 = vadd.f32 %v2920_v6, %v1581_v41  ;;  %4520 = vmatprep.mubr.bf16.mxu0 %v3130_v3 }
 0x323   : > { %v3073_v49 = vadd.f32 %v4574_v5, %v5688_v13  ;;  %4521 = vmatmul.mubr.bf16.vlgmr.msra.gmra.mrb[64].mxu0 %v3131_v55  ;;  %v3104_v24 = vmax.f32 %v3072_v4, 0.0 }
 0x324   : > { %v3071_v54 = vadd.f32 %v4575_v8, %v5688_v13  ;;  %v3102_v11 = vmax.f32 %v3070_v7, 0.0 }
 0x325   : > { %v3105_v26 = vmax.f32 %v3073_v49, 0.0 }
 0x326   : > { %v3103_v56 = vmax.f32 %v3071_v54, 0.0  ;;  %v4482_v57 = vpop.f32.mrb[24].mxu1 }
 0x327   : > { %v4576_v58 = vadd.f32 %v4482_v57, %v4242_v45  ;;  %v2933_v60 = vpop.f32.mrb[25].mxu1  ;;  %v3133_v27 = vpack.c.bf16 %v3105_v26, %v3104_v24 }
 0x328   : > { %v4577_v29 = vadd.f32 %v2933_v60, %v1594_v10  ;;  %v4483_v62 = vpop.f32.mrb[26].mxu1  ;;  %v3132_v30 = vpack.c.bf16 %v3103_v56, %v3102_v11 }
 0x329   : > { %v3076_v31 = vadd.f32 %v4576_v58, %v5688_v13  ;;  %v4578_v41 = vadd.f32 %v4483_v62, %v4243_v14  ;;  %v2936_v32 = vpop.f32.mrb[27].mxu1 }
 0x32a   : > { %v3074_v43 = vadd.f32 %v4577_v29, %v5688_v13  ;;  %v4579_v9 = vadd.f32 %v2936_v32, %v1597_v15  ;;  %4524 = vmatprep.mubr.bf16.mxu0 %v3132_v30 }
 0x32b   : > { %v3077_v50 = vadd.f32 %v4578_v41, %v5688_v13  ;;  %4525 = vmatmul.mubr.bf16.gmra.mrb[68].mxu0 %v3133_v27  ;;  %v3108_v37 = vmax.f32 %v3076_v31, 0.0 }
 0x32c   : > { %v3075_v36 = vadd.f32 %v4579_v9, %v5688_v13  ;;  %v3106_v39 = vmax.f32 %v3074_v43, 0.0 }
 0x32d   : > { %v3109_v45 = vmax.f32 %v3077_v50, 0.0 }
 0x32e   : > { %v3107_v44 = vmax.f32 %v3075_v36, 0.0  ;;  %v4486_v10 = vpop.f32.mrb[28].mxu1 }
 0x32f   : > { %v4580_v46 = vadd.f32 %v4486_v10, %v4246_v19  ;;  %v2949_v47 = vpop.f32.mrb[29].mxu1  ;;  %v3135_v51 = vpack.c.bf16 %v3109_v45, %v3108_v37 }
 0x330   : > { %v4581_v14 = vadd.f32 %v2949_v47, %v5679_v21  ;;  %v4487_v52 = vpop.f32.mrb[30].mxu1  ;;  %v3134_v53 = vpack.c.bf16 %v3107_v44, %v3106_v39 }
 0x331   : > { %v3080_v15 = vadd.f32 %v4580_v46, %v5688_v13  ;;  %v4582_v55 = vadd.f32 %v4487_v52, %v5681_v23  ;;  %v2952_v48 = vpop.f32.mrb[31].mxu1 }
 0x332   : > { %v3078_v12 = vadd.f32 %v4581_v14, %v5688_v13  ;;  %v4583_v63 = vadd.f32 %v2952_v48, %v5683_v0  ;;  %4528 = vmatprep.mubr.bf16.mxu0 %v3134_v53 }
 0x333   : > { %v3081_v1 = vadd.f32 %v4582_v55, %v5688_v13  ;;  %4529 = vmatmul.mubr.bf16.gmra.mrb[72].mxu0 %v3135_v51  ;;  %v3112_v3 = vmax.f32 %v3080_v15, 0.0 }
 0x334   : > { %v3079_v19 = vadd.f32 %v4583_v63, %v5688_v13  ;;  %v3110_v21 = vmax.f32 %v3078_v12, 0.0 }
 0x335   : > { %v3113_v4 = vmax.f32 %v3081_v1, 0.0 }
 0x336   : > { %v3111_v5 = vmax.f32 %v3079_v19, 0.0  ;;  %v4490_v6 = vpop.f32.mrb[0].mxu1 }
 0x337   : > { %v4584_v7 = vadd.f32 %v4490_v6, %v5638_v16  ;;  %v2965_v8 = vpop.f32.mrb[1].mxu1  ;;  %v3137_v23 = vpack.c.bf16 %v3113_v4, %v3112_v3 }
 0x338   : > { %v4585_v49 = vadd.f32 %v2965_v8, %v5640_v33  ;;  %v4491_v54 = vpop.f32.mrb[2].mxu1  ;;  %v3136_v24 = vpack.c.bf16 %v3111_v5, %v3110_v21 }
 0x339   : > { %v3084_v0 = vadd.f32 %v4584_v7, %v5688_v13  ;;  %v4586_v26 = vadd.f32 %v4491_v54, %v5642_v35  ;;  %v2968_v11 = vpop.f32.mrb[3].mxu1 }
 0x33a   : > { %v3082_v56 = vadd.f32 %v4585_v49, %v5688_v13  ;;  %v4587_v57 = vadd.f32 %v2968_v11, %v5644_v40  ;;  %4532 = vmatprep.mubr.bf16.mxu0 %v3136_v24 }
 0x33b   : > { %v3085_v58 = vadd.f32 %v4586_v26, %v5688_v13  ;;  %4533 = vmatmul.mubr.bf16.gmra.mrb[76].mxu0 %v3137_v23  ;;  %v3116_v60 = vmax.f32 %v3084_v0, 0.0 }
 0x33c   : > { %v3083_v16 = vadd.f32 %v4587_v57, %v5688_v13  ;;  %v3114_v33 = vmax.f32 %v3082_v56, 0.0 }
 0x33d   : > { %v3117_v27 = vmax.f32 %v3085_v58, 0.0 }
 0x33e   : > { %v3115_v29 = vmax.f32 %v3083_v16, 0.0  ;;  %v4494_v62 = vpop.f32.mrb[4].mxu1 }
 0x33f   : > { %v4588_v30 = vadd.f32 %v4494_v62, %v5646_v59  ;;  %v2981_v31 = vpop.f32.mrb[5].mxu1  ;;  %v3139_v35 = vpack.c.bf16 %v3117_v27, %v3116_v60 }
 0x340   : > { %v4589_v41 = vadd.f32 %v2981_v31, %v5648_v61  ;;  %v4495_v32 = vpop.f32.mrb[6].mxu1  ;;  %v3138_v43 = vpack.c.bf16 %v3115_v29, %v3114_v33  ;;  %v4922_v33 = vld [vmem:[%s5029_s12 + $0x10] sm:$0xff]  ;;  %v4923_v31 = vld [vmem:[%s5029_s12] sm:$0xff] }
 0x341   : > { %v3088_v40 = vadd.f32 %v4588_v30, %v5688_v13  ;;  %v4590_v9 = vadd.f32 %v4495_v32, %v5650_v2  ;;  %v2984_v50 = vpop.f32.mrb[7].mxu1 }
 0x342   : > { %v3086_v36 = vadd.f32 %v4589_v41, %v5688_v13  ;;  %v4591_v37 = vadd.f32 %v2984_v50, %v5652_v17  ;;  %4536 = vmatprep.mubr.bf16.mxu0 %v3138_v43  ;;  %v4924_v43 = vld [vmem:[%s5029_s12 + $0x18] sm:$0xff]  ;;  %v4925_v50 = vld [vmem:[%s5029_s12 + $0x8] sm:$0xff] }
 0x343   : > { %v3089_v45 = vadd.f32 %v4590_v9, %v5688_v13  ;;  %4537 = vmatmul.mubr.bf16.gmra.mrb[80].mxu0 %v3139_v35  ;;  %v3120_v39 = vmax.f32 %v3088_v40, 0.0 }
 0x344   : > { %v3087_v59 = vadd.f32 %v4591_v37, %v5688_v13  ;;  %v3118_v61 = vmax.f32 %v3086_v36, 0.0 }
 0x345   : > { %v3121_v44 = vmax.f32 %v3089_v45, 0.0 }
 0x346   : > { %v3119_v10 = vmax.f32 %v3087_v59, 0.0  ;;  %v4498_v46 = vpop.f32.mrb[8].mxu1 }
 0x347   : > { %v4592_v47 = vadd.f32 %v4498_v46, %v5654_v34  ;;  %v2997_v51 = vpop.f32.mrb[9].mxu1  ;;  %v3141_v2 = vpack.c.bf16 %v3121_v44, %v3120_v39  ;;  %v4926_v46 = vld [vmem:[%s5029_s12 + $0x30] sm:$0xff] }
 0x348   : > { %v4593_v14 = vadd.f32 %v2997_v51, %v5656_v38  ;;  %v4499_v52 = vpop.f32.mrb[10].mxu1  ;;  %v3140_v53 = vpack.c.bf16 %v3119_v10, %v3118_v61 }
 0x349   : > { %v3092_v17 = vadd.f32 %v4592_v47, %v5688_v13  ;;  %v4594_v15 = vadd.f32 %v4499_v52, %v5658_v25  ;;  %v3000_v55 = vpop.f32.mrb[11].mxu1 }
 0x34a   : > { %v3090_v48 = vadd.f32 %v4593_v14, %v5688_v13  ;;  %v4595_v12 = vadd.f32 %v3000_v55, %v5660_v42  ;;  %4540 = vmatprep.mubr.bf16.mxu0 %v3140_v53  ;;  %v4927_v14 = vld [vmem:[%s5029_s12 + $0x20] sm:$0xff] }
 0x34b   : > { %v3093_v63 = vadd.f32 %v4594_v15, %v5688_v13  ;;  %4541 = vmatmul.mubr.bf16.gmra.mrb[84].mxu0 %v3141_v2  ;;  %v3124_v1 = vmax.f32 %v3092_v17, 0.0  ;;  %v4928_v15 = vld [vmem:[%s5029_s12 + $0x38] sm:$0xff] }
 0x34c   : > { %v3091_v34 = vadd.f32 %v4595_v12, %v5688_v13  ;;  %v3122_v38 = vmax.f32 %v3090_v48, 0.0  ;;  %v4929_v12 = vld [vmem:[%s5029_s12 + $0x28] sm:$0xff] }
 0x34d   : > { %v3125_v19 = vmax.f32 %v3093_v63, 0.0 }
 0x34e   : > { %v3123_v3 = vmax.f32 %v3091_v34, 0.0  ;;  %v4502_v4 = vpop.f32.mrb[12].mxu1 }
 0x34f   : > { %v4596_v21 = vadd.f32 %v4502_v4, %v5665_v18  ;;  %v3013_v5 = vpop.f32.mrb[13].mxu1  ;;  %v3143_v25 = vpack.c.bf16 %v3125_v19, %v3124_v1 }
 0x350   : > { %v4597_v6 = vadd.f32 %v3013_v5, %v5667_v20  ;;  %v4503_v7 = vpop.f32.mrb[14].mxu1  ;;  %v3142_v8 = vpack.c.bf16 %v3123_v3, %v3122_v38  ;;  %v4930_v5 = vld [vmem:[%s5029_s12 + $0x50] sm:$0xff] }
 0x351   : > { %v3096_v42 = vadd.f32 %v4596_v21, %v5688_v13  ;;  %v4598_v23 = vadd.f32 %v4503_v7, %v5669_v22  ;;  %v3016_v49 = vpop.f32.mrb[15].mxu1 }
 0x352   : > { %v3094_v54 = vadd.f32 %v4597_v6, %v5688_v13  ;;  %v4599_v24 = vadd.f32 %v3016_v49, %v5671_v28  ;;  %4544 = vmatprep.mubr.bf16.mxu0 %v3142_v8  ;;  %v5744_v28 = vld [vmem:[%s5858_s6] ss:$0 sm:$0xff] }
 0x353   : > { %v3097_v0 = vadd.f32 %v4598_v23, %v5688_v13  ;;  %4545 = vmatmul.mubr.bf16.gmra.mrb[88].mxu0 %v3143_v25  ;;  %v3128_v26 = vmax.f32 %v3096_v42, 0.0  ;;  %v4931_v8 = vld [vmem:[%s5029_s12 + $0x40] sm:$0xff] }
 0x354   : > { %v3095_v18 = vadd.f32 %v4599_v24, %v5688_v13  ;;  %v3126_v11 = vmax.f32 %v3094_v54, 0.0  ;;  %v4932_v54 = vld [vmem:[%s5029_s12 + $0x58] sm:$0xff] }
 0x355   : > { %v3129_v20 = vmax.f32 %v3097_v0, 0.0 }
 0x356   : > { %v3127_v56 = vmax.f32 %v3095_v18, 0.0  ;;  %v4933_v18 = vld [vmem:[%s5029_s12 + $0x48] sm:$0xff] }
 0x357   : > { %v3145_v57 = vpack.c.bf16 %v3129_v20, %v3128_v26 }
 0x358   : > { %v3144_v22 = vpack.c.bf16 %v3127_v56, %v3126_v11 }
 0x35a   : > { %4548 = vmatprep.mubr.bf16.mxu0 %v3144_v22 }
 0x35b   : > { %4549 = vmatmul.mubr.bf16.gmra.mrb[92].mxu0 %v3145_v57 }
 0x3f6   : > { %v4522_v58 = vpop.f32.mrb[64].mxu0 }
 0x3f7   : > { %v3259_v16 = vadd.f32 %v4522_v58, %v5744_v28  ;;  %v3250_v13 = vpop.f32.mrb[65].mxu0 }
 0x3f8   : > { %v3251_v60 = vadd.f32 %v5744_v28, %v3250_v13  ;;  %v4523_v27 = vpop.f32.mrb[66].mxu0  ;;  %v4934_v13 = vld [vmem:[%s5029_s12 + $0x70] sm:$0xff] }
 0x3f9   : > { %v3379_v29 = vadd.f32 %v4922_v33, %v3259_v16  ;;  %v3262_v62 = vadd.f32 %v4523_v27, %v5744_v28  ;;  %v3253_v30 = vpop.f32.mrb[67].mxu0 }
 0x3fa   : > { %v3377_v35 = vadd.f32 %v4923_v31, %v3251_v60  ;;  %v3254_v41 = vadd.f32 %v5744_v28, %v3253_v30 }
 0x3fb   : > { %v3411_v32 = vmax.f32 %v3379_v29, 0.0  ;;  %v3380_v40 = vadd.f32 %v4924_v43, %v3262_v62  ;;  %v4935_v29 = vld [vmem:[%s5029_s12 + $0x60] sm:$0xff]  ;;  %v4937_v43 = vld [vmem:[%s5029_s12 + $0x68] sm:$0xff] }
 0x3fc   : > { %v3409_v9 = vmax.f32 %v3377_v35, 0.0  ;;  %v3378_v36 = vadd.f32 %v4925_v50, %v3254_v41  ;;  %v4936_v35 = vld [vmem:[%s5029_s12 + $0x78] sm:$0xff] }
 0x3fd   : > { %3443 = vst [vmem:[%s5755_s20 + $0x10] sm:$0xff] %v3411_v32  ;;  %v3412_v37 = vmax.f32 %v3380_v40, 0.0 }
 0x3fe   : > { %3441 = vst [vmem:[%s5755_s20] sm:$0xff] %v3409_v9  ;;  %v3410_v45 = vmax.f32 %v3378_v36, 0.0  ;;  %v4526_v59 = vpop.f32.mrb[68].mxu0 }
 0x3ff   : > { %3444 = vst [vmem:[%s5755_s20 + $0x18] sm:$0xff] %v3412_v37  ;;  %v3275_v39 = vadd.f32 %v4526_v59, %v5744_v28  ;;  %v3266_v44 = vpop.f32.mrb[69].mxu0 }
 0x400   : > { %3442 = vst [vmem:[%s5755_s20 + $0x8] sm:$0xff] %v3410_v45  ;;  %v3267_v61 = vadd.f32 %v5744_v28, %v3266_v44  ;;  %v4527_v10 = vpop.f32.mrb[70].mxu0  ;;  %v4938_v44 = vld [vmem:[%s5029_s12 + $0x90] sm:$0xff] }
 0x401   : > { %v3383_v47 = vadd.f32 %v4926_v46, %v3275_v39  ;;  %v3278_v51 = vadd.f32 %v4527_v10, %v5744_v28  ;;  %v3269_v2 = vpop.f32.mrb[71].mxu0 }
 0x402   : > { %v3381_v52 = vadd.f32 %v4927_v14, %v3267_v61  ;;  %v3270_v53 = vadd.f32 %v5744_v28, %v3269_v2 }
 0x403   : > { %v3415_v17 = vmax.f32 %v3383_v47, 0.0  ;;  %v3384_v55 = vadd.f32 %v4928_v15, %v3278_v51  ;;  %v4939_v47 = vld [vmem:[%s5029_s12 + $0x80] sm:$0xff]  ;;  %v4941_v15 = vld [vmem:[%s5029_s12 + $0x88] sm:$0xff] }
 0x404   : > { %v3413_v48 = vmax.f32 %v3381_v52, 0.0  ;;  %v3382_v63 = vadd.f32 %v4929_v12, %v3270_v53  ;;  %v4940_v52 = vld [vmem:[%s5029_s12 + $0x98] sm:$0xff] }
 0x405   : > { %3447 = vst [vmem:[%s5755_s20 + $0x30] sm:$0xff] %v3415_v17  ;;  %v3416_v34 = vmax.f32 %v3384_v55, 0.0 }
 0x406   : > { %3445 = vst [vmem:[%s5755_s20 + $0x20] sm:$0xff] %v3413_v48  ;;  %v3414_v1 = vmax.f32 %v3382_v63, 0.0  ;;  %v4530_v19 = vpop.f32.mrb[72].mxu0 }
 0x407   : > { %3448 = vst [vmem:[%s5755_s20 + $0x38] sm:$0xff] %v3416_v34  ;;  %v3291_v38 = vadd.f32 %v4530_v19, %v5744_v28  ;;  %v3282_v3 = vpop.f32.mrb[73].mxu0 }
 0x408   : > { %3446 = vst [vmem:[%s5755_s20 + $0x28] sm:$0xff] %v3414_v1  ;;  %v3283_v4 = vadd.f32 %v5744_v28, %v3282_v3  ;;  %v4531_v21 = vpop.f32.mrb[74].mxu0  ;;  %v4942_v3 = vld [vmem:[%s5029_s12 + $0xb0] sm:$0xff] }
 0x409   : > { %v3387_v25 = vadd.f32 %v4930_v5, %v3291_v38  ;;  %v3294_v6 = vadd.f32 %v4531_v21, %v5744_v28  ;;  %v3285_v7 = vpop.f32.mrb[75].mxu0 }
 0x40a   : > { %v3385_v42 = vadd.f32 %v4931_v8, %v3283_v4  ;;  %v3286_v23 = vadd.f32 %v5744_v28, %v3285_v7 }
 0x40b   : > { %v3419_v49 = vmax.f32 %v3387_v25, 0.0  ;;  %v3388_v24 = vadd.f32 %v4932_v54, %v3294_v6  ;;  %v4943_v25 = vld [vmem:[%s5029_s12 + $0xa0] sm:$0xff]  ;;  %v4945_v54 = vld [vmem:[%s5029_s12 + $0xa8] sm:$0xff] }
 0x40c   : > { %v3417_v0 = vmax.f32 %v3385_v42, 0.0  ;;  %v3386_v26 = vadd.f32 %v4933_v18, %v3286_v23  ;;  %v4944_v42 = vld [vmem:[%s5029_s12 + $0xb8] sm:$0xff] }
 0x40d   : > { %3451 = vst [vmem:[%s5755_s20 + $0x50] sm:$0xff] %v3419_v49  ;;  %v3420_v20 = vmax.f32 %v3388_v24, 0.0 }
 0x40e   : > { %3449 = vst [vmem:[%s5755_s20 + $0x40] sm:$0xff] %v3417_v0  ;;  %v3418_v11 = vmax.f32 %v3386_v26, 0.0  ;;  %v4534_v56 = vpop.f32.mrb[76].mxu0 }
 0x40f   : > { %3452 = vst [vmem:[%s5755_s20 + $0x58] sm:$0xff] %v3420_v20  ;;  %v3307_v57 = vadd.f32 %v4534_v56, %v5744_v28  ;;  %v3298_v22 = vpop.f32.mrb[77].mxu0 }
 0x410   : > { %3450 = vst [vmem:[%s5755_s20 + $0x48] sm:$0xff] %v3418_v11  ;;  %v3299_v58 = vadd.f32 %v5744_v28, %v3298_v22  ;;  %v4535_v16 = vpop.f32.mrb[78].mxu0  ;;  %v4946_v22 = vld [vmem:[%s5029_s12 + $0xd0] sm:$0xff] }
 0x411   : > { %v3391_v60 = vadd.f32 %v4934_v13, %v3307_v57  ;;  %v3310_v27 = vadd.f32 %v4535_v16, %v5744_v28  ;;  %v3301_v33 = vpop.f32.mrb[79].mxu0 }
 0x412   : > { %v3389_v62 = vadd.f32 %v4935_v29, %v3299_v58  ;;  %v3302_v30 = vadd.f32 %v5744_v28, %v3301_v33 }
 0x413   : > { %v3423_v31 = vmax.f32 %v3391_v60, 0.0  ;;  %v3392_v41 = vadd.f32 %v4936_v35, %v3310_v27  ;;  %v4947_v60 = vld [vmem:[%s5029_s12 + $0xc0] sm:$0xff]  ;;  %v4949_v35 = vld [vmem:[%s5029_s12 + $0xc8] sm:$0xff] }
 0x414   : > { %v3421_v32 = vmax.f32 %v3389_v62, 0.0  ;;  %v3390_v40 = vadd.f32 %v4937_v43, %v3302_v30  ;;  %v4948_v62 = vld [vmem:[%s5029_s12 + $0xd8] sm:$0xff] }
 0x415   : > { %3455 = vst [vmem:[%s5755_s20 + $0x70] sm:$0xff] %v3423_v31  ;;  %v3424_v9 = vmax.f32 %v3392_v41, 0.0 }
 0x416   : > { %3453 = vst [vmem:[%s5755_s20 + $0x60] sm:$0xff] %v3421_v32  ;;  %v3422_v50 = vmax.f32 %v3390_v40, 0.0  ;;  %v4538_v36 = vpop.f32.mrb[80].mxu0 }
 0x417   : > { %3456 = vst [vmem:[%s5755_s20 + $0x78] sm:$0xff] %v3424_v9  ;;  %v3323_v37 = vadd.f32 %v4538_v36, %v5744_v28  ;;  %v3314_v45 = vpop.f32.mrb[81].mxu0 }
 0x418   : > { %3454 = vst [vmem:[%s5755_s20 + $0x68] sm:$0xff] %v3422_v50  ;;  %v3315_v59 = vadd.f32 %v5744_v28, %v3314_v45  ;;  %v4539_v39 = vpop.f32.mrb[82].mxu0  ;;  %v4950_v45 = vld [vmem:[%s5029_s12 + $0xf0] sm:$0xff] }
 0x419   : > { %v3395_v61 = vadd.f32 %v4938_v44, %v3323_v37  ;;  %v3326_v10 = vadd.f32 %v4539_v39, %v5744_v28  ;;  %v3317_v46 = vpop.f32.mrb[83].mxu0 }
 0x41a   : > { %v3393_v51 = vadd.f32 %v4939_v47, %v3315_v59  ;;  %v3318_v2 = vadd.f32 %v5744_v28, %v3317_v46 }
 0x41b   : > { %v3427_v14 = vmax.f32 %v3395_v61, 0.0  ;;  %v3396_v53 = vadd.f32 %v4940_v52, %v3326_v10  ;;  %v4951_v61 = vld [vmem:[%s5029_s12 + $0xe0] sm:$0xff]  ;;  %v4953_v52 = vld [vmem:[%s5029_s12 + $0xe8] sm:$0xff] }
 0x41c   : > { %v3425_v17 = vmax.f32 %v3393_v51, 0.0  ;;  %v3394_v55 = vadd.f32 %v4941_v15, %v3318_v2  ;;  %v4952_v51 = vld [vmem:[%s5029_s12 + $0xf8] sm:$0xff] }
 0x41d   : > { %3459 = vst [vmem:[%s5755_s20 + $0x90] sm:$0xff] %v3427_v14  ;;  %v3428_v48 = vmax.f32 %v3396_v53, 0.0 }
 0x41e   : > { %3457 = vst [vmem:[%s5755_s20 + $0x80] sm:$0xff] %v3425_v17  ;;  %v3426_v12 = vmax.f32 %v3394_v55, 0.0  ;;  %v4542_v63 = vpop.f32.mrb[84].mxu0 }
 0x41f   : > { %3460 = vst [vmem:[%s5755_s20 + $0x98] sm:$0xff] %v3428_v48  ;;  %v3339_v34 = vadd.f32 %v4542_v63, %v5744_v28  ;;  %v3330_v1 = vpop.f32.mrb[85].mxu0 }
 0x420   : > { %3458 = vst [vmem:[%s5755_s20 + $0x88] sm:$0xff] %v3426_v12  ;;  %v3331_v19 = vadd.f32 %v5744_v28, %v3330_v1  ;;  %v4543_v38 = vpop.f32.mrb[86].mxu0 }
 0x421   : > { %v3399_v4 = vadd.f32 %v4942_v3, %v3339_v34  ;;  %v3342_v21 = vadd.f32 %v4543_v38, %v5744_v28  ;;  %v3333_v5 = vpop.f32.mrb[87].mxu0 }
 0x422   : > { %v3397_v6 = vadd.f32 %v4943_v25, %v3331_v19  ;;  %v3334_v7 = vadd.f32 %v5744_v28, %v3333_v5 }
 0x423   : > { %v3431_v8 = vmax.f32 %v3399_v4, 0.0  ;;  %v3400_v23 = vadd.f32 %v4944_v42, %v3342_v21 }
 0x424   : > { %v3429_v49 = vmax.f32 %v3397_v6, 0.0  ;;  %v3398_v24 = vadd.f32 %v4945_v54, %v3334_v7 }
 0x425   : > { %3463 = vst [vmem:[%s5755_s20 + $0xb0] sm:$0xff] %v3431_v8  ;;  %v3432_v0 = vmax.f32 %v3400_v23, 0.0 }
 0x426   : > { %3461 = vst [vmem:[%s5755_s20 + $0xa0] sm:$0xff] %v3429_v49  ;;  %v3430_v18 = vmax.f32 %v3398_v24, 0.0  ;;  %v4546_v26 = vpop.f32.mrb[88].mxu0 }
 0x427   : > { %3464 = vst [vmem:[%s5755_s20 + $0xb8] sm:$0xff] %v3432_v0  ;;  %v3355_v20 = vadd.f32 %v4546_v26, %v5744_v28  ;;  %v3346_v11 = vpop.f32.mrb[89].mxu0 }
 0x428   : > { %3462 = vst [vmem:[%s5755_s20 + $0xa8] sm:$0xff] %v3430_v18  ;;  %v3347_v56 = vadd.f32 %v5744_v28, %v3346_v11  ;;  %v4547_v57 = vpop.f32.mrb[90].mxu0 }
 0x429   : > { %v3403_v58 = vadd.f32 %v4946_v22, %v3355_v20  ;;  %v3358_v16 = vadd.f32 %v4547_v57, %v5744_v28  ;;  %v3349_v13 = vpop.f32.mrb[91].mxu0 }
 0x42a   : > { %v3401_v27 = vadd.f32 %v4947_v60, %v3347_v56  ;;  %v3350_v33 = vadd.f32 %v5744_v28, %v3349_v13 }
 0x42b   : > { %v3435_v29 = vmax.f32 %v3403_v58, 0.0  ;;  %v3404_v30 = vadd.f32 %v4948_v62, %v3358_v16 }
 0x42c   : > { %v3433_v31 = vmax.f32 %v3401_v27, 0.0  ;;  %v3402_v41 = vadd.f32 %v4949_v35, %v3350_v33 }
 0x42d   : > { %3467 = vst [vmem:[%s5755_s20 + $0xd0] sm:$0xff] %v3435_v29  ;;  %v3436_v32 = vmax.f32 %v3404_v30, 0.0 }
 0x42e   : > { %3465 = vst [vmem:[%s5755_s20 + $0xc0] sm:$0xff] %v3433_v31  ;;  %v3434_v43 = vmax.f32 %v3402_v41, 0.0  ;;  %v4550_v40 = vpop.f32.mrb[92].mxu0 }
 0x42f   : > { %3468 = vst [vmem:[%s5755_s20 + $0xd8] sm:$0xff] %v3436_v32  ;;  %v3371_v9 = vadd.f32 %v4550_v40, %v5744_v28  ;;  %v3362_v50 = vpop.f32.mrb[93].mxu0 }
 0x430   : > { %3466 = vst [vmem:[%s5755_s20 + $0xc8] sm:$0xff] %v3434_v43  ;;  %v3363_v36 = vadd.f32 %v5744_v28, %v3362_v50  ;;  %v4551_v37 = vpop.f32.mrb[94].mxu0 }
 0x431   : > { %v3407_v59 = vadd.f32 %v4950_v45, %v3371_v9  ;;  %v3374_v39 = vadd.f32 %v4551_v37, %v5744_v28  ;;  %v3365_v44 = vpop.f32.mrb[95].mxu0 }
 0x432   : > { %v3405_v10 = vadd.f32 %v4951_v61, %v3363_v36  ;;  %v3366_v46 = vadd.f32 %v5744_v28, %v3365_v44 }
 0x433   : > { %v3439_v47 = vmax.f32 %v3407_v59, 0.0  ;;  %v3408_v2 = vadd.f32 %v4952_v51, %v3374_v39 }
 0x434   : > { %v3437_v14 = vmax.f32 %v3405_v10, 0.0  ;;  %v3406_v53 = vadd.f32 %v4953_v52, %v3366_v46 }
 0x435   : > { %3471 = vst [vmem:[%s5755_s20 + $0xf0] sm:$0xff] %v3439_v47  ;;  %v3440_v17 = vmax.f32 %v3408_v2, 0.0 }
 0x436   : > { %3469 = vst [vmem:[%s5755_s20 + $0xe0] sm:$0xff] %v3437_v14  ;;  %v3438_v15 = vmax.f32 %v3406_v53, 0.0 }
 0x437   : > { %3472 = vst [vmem:[%s5755_s20 + $0xf8] sm:$0xff] %v3440_v17 }
 0x438   : > { %3470 = vst [vmem:[%s5755_s20 + $0xe8] sm:$0xff] %v3438_v15 }
 0x439 PF: > { %s17_s24 = sadd.s32 1, %s4960_s24  }
 0x43a   : > { %p14_p4 = scmp.ge.s32.totalorder %s17_s24, 4  }
 0x43c   :  { %16 = sbr.rel (!%p14_p4) target bundleno = 1 (0x1), region = 86 }

</bundles_post_ra>
